<compile_context>
chip_gen: v7x
topology: tpu7x:2x2x1
jax: 0.10.0
libtpu: 0.0.40
codegen_flags: <defaults>
</compile_context>

<pallas_src>
import functools
import math

import jax
import jax.numpy as jnp
from jax.experimental import pallas as pl
from jax.experimental.pallas import tpu as pltpu

LN_EPS = 1e-5   # nn.LayerNorm default
LANE = 128


def _round_up(x, m):
    return ((x + m - 1) // m) * m


def _num_tensorcores():
    """Heuristic: dual-TensorCore parts (v4 / v5p / v7x) vs single-TC parts."""
    try:
        kind = jax.devices()[0].device_kind.lower()
    except Exception:
        return 1
    if "lite" in kind or "v5e" in kind or "v6e" in kind or "v6 lite" in kind:
        return 1
    if any(tag in kind for tag in ("v4", "v5p", "v7")):
        return 2
    return 1


def _vmem_limit_bytes():
    """Per-generation scoped-VMEM limit (3/4 of physical, capped at 96 MiB)."""
    try:
        phys = int(pltpu.get_tpu_info().vmem_capacity_bytes)
        return max(32 * 1024 * 1024, min(phys * 3 // 4, 96 * 1024 * 1024))
    except Exception:
        return 48 * 1024 * 1024


def _pick_block_b(B, L, n_tc):
    """Largest sublane-legal batch tile.  Single-TC parts get the biggest slab
    (fewer grid steps); dual-TC parts keep >= 2 'parallel' steps when B allows."""
    valid = [bt for bt in range(1, B + 1)
             if B % bt == 0
             and (bt == 1 or L % 8 == 0)              # in-kernel reshape stays a no-op
             and ((bt * L) % 8 == 0 or bt == B)]      # sublane-legal block rows
    if not valid:
        return B
    big = [bt for bt in valid if bt * L <= 512] or [min(valid)]
    bt = max(big)
    if n_tc >= 2:
        multi = [d for d in big if B // d >= 2]
        if multi:
            bt = max(multi)
    return bt


def _layer_norm_padded(x, gamma, beta, d_true):
    """LayerNorm over the TRUE d_model.  `x` has exact zeros in the padded
    feature columns and gamma/beta are zero there, so padded columns stay 0."""
    inv_d = 1.0 / float(d_true)
    mean = jnp.sum(x, axis=-1, keepdims=True) * inv_d
    meansq = jnp.sum(x * x, axis=-1, keepdims=True) * inv_d
    var = meansq - mean * mean
    return (x - mean) * jax.lax.rsqrt(var + LN_EPS) * gamma + beta


def encoder_stack_kernel(n_head, d_k, d_kp, d_vp, d_model, bt, L,
                         x_ref, mask_ref, nonpad_ref,
                         wqkv_ref, bqkv_ref, wo_ref, w1_ref, b1_ref, w2_ref,
                         vecs_ref, out_ref, heads_ref):
    """One (batch_tile, layer) grid step of the fused encoder stack.

    x_ref:      (bt*L, Dp)  flattened token activations (f32), read at layer 0
    mask_ref:   (bt, 1, L)  additive key-pad mask (0 or -1e9)
    nonpad_ref: (bt*L, 1)   1.0 where token is not PAD
    wqkv_ref:   (Dp, H*(2*d_kp + d_vp)) bf16 fused head-padded Q/K/V projection
    bqkv_ref:   (1, H*(2*d_kp + d_vp)) f32
    wo_ref:     (H*d_vp, Dp) bf16     w1/w2: FFN weights (bf16, padded)
    vecs_ref:   (6, Dp) f32 = [bo, b2, ln1_g, ln1_b, ln2_g, ln2_b]
    out_ref:    (bt*L, Dp)  carries the activation across the layer axis
    heads_ref:  (bt*L, H*d_vp) VMEM scratch for per-head attention outputs
    """
    layer = pl.program_id(1)

    @pl.when(layer == 0)
    def _():
        out_ref[...] = x_ref[...]

    tok = out_ref[...]                       # (M, Dp) f32, resident across layers
    nonpad = nonpad_ref[...]                 # (M, 1)
    mask = mask_ref[...]                     # (bt, 1, L) additive key-pad mask

    vecs = vecs_ref[...]                     # (6, Dp)
    bo, b2 = vecs[0:1], vecs[1:2]
    ln1_g, ln1_b = vecs[2:3], vecs[3:4]
    ln2_g, ln2_b = vecs[4:5], vecs[5:6]

    hk = n_head * d_kp
    hv = n_head * d_vp
    M = bt * L
    scale = 1.0 / math.sqrt(d_k)             # temperature uses the TRUE d_k

    # ---- fused Q/K/V projection: one wide MXU matmul (bf16 in, f32 acc) ----
    qkv = jnp.dot(tok.astype(jnp.bfloat16), wqkv_ref[...],
                  preferred_element_type=jnp.float32) + bqkv_ref[...]

    # Head-padded, 128-lane-aligned sections; the reshape only regroups whole
    # sublane tiles (L % 8 == 0 or bt == 1), so the attention matmuls below can
    # batch over the bt sequences with 3-D dot_generals.
    q3 = (qkv[:, :hk] * scale).reshape(bt, L, hk)
    k3 = qkv[:, hk:2 * hk].reshape(bt, L, hk)
    v3 = qkv[:, 2 * hk:].reshape(bt, L, hv)

    # ---- scaled-dot-product attention, batched over sequences per head ----
    for h in range(n_head):
        qh = q3[:, :, h * d_kp:(h + 1) * d_kp].astype(jnp.bfloat16)
        kh = k3[:, :, h * d_kp:(h + 1) * d_kp].astype(jnp.bfloat16)
        vh = v3[:, :, h * d_vp:(h + 1) * d_vp].astype(jnp.bfloat16)
        s = jnp.einsum('bqd,bkd->bqk', qh, kh,
                       preferred_element_type=jnp.float32)      # (bt, L, L)
        s = s + mask                                             # key-pad mask
        s = s - jnp.max(s, axis=-1, keepdims=True)
        p = jnp.exp(s)
        p = p * pl.reciprocal(jnp.sum(p, axis=-1, keepdims=True), approx=True)
        o = jnp.einsum('bqk,bkd->bqd', p.astype(jnp.bfloat16), vh,
                       preferred_element_type=jnp.float32)       # (bt, L, d_vp)
        # lane-aligned slice store into the heads scratch (plain vst, no concat)
        heads_ref[:, h * d_vp:(h + 1) * d_vp] = o.reshape(M, d_vp)

    # ---- output projection + residual + LayerNorm + pad-row mask ----
    attn = jnp.dot(heads_ref[...].astype(jnp.bfloat16), wo_ref[...],
                   preferred_element_type=jnp.float32) + bo
    attn = _layer_norm_padded(attn + tok, ln1_g, ln1_b, d_model) * nonpad

    # ---- position-wise feed-forward (1x1 convs == dense) ----
    hidden = jnp.dot(attn.astype(jnp.bfloat16), w1_ref[...],
                     preferred_element_type=jnp.float32) + b1_ref[...]
    hidden = jnp.maximum(hidden, 0.0)
    ffn = jnp.dot(hidden.astype(jnp.bfloat16), w2_ref[...],
                  preferred_element_type=jnp.float32) + b2
    out = _layer_norm_padded(ffn + attn, ln2_g, ln2_b, d_model) * nonpad

    out_ref[...] = out


def encoder_stack_apply(x, addmask, nonpad, stacked, *, n_head, d_k, d_kp,
                        d_vp, d_model, block_b, vmem_limit):
    """Runs the fused n_layers encoder stack in a single pallas_call."""
    B, L, Dp = x.shape
    nb = B // block_b
    n_layers = stacked["wqkv"].shape[0]
    M = block_b * L

    x2 = x.reshape(B * L, Dp)
    nonpad2 = nonpad.reshape(B * L, 1)

    kernel = functools.partial(encoder_stack_kernel, n_head, d_k, d_kp, d_vp,
                               d_model, block_b, L)

    weight_names = ("wqkv", "bqkv", "wo", "w1", "b1", "w2", "vecs")
    weights = [stacked[k] for k in weight_names]

    def wspec(a):
        # (n_layers, r, c) -> kernel sees the (r, c) slab of the current layer
        r, c = a.shape[1], a.shape[2]
        return pl.BlockSpec((None, r, c), lambda b, l: (l, 0, 0))

    in_specs = ([pl.BlockSpec((M, Dp), lambda b, l: (b, 0)),
                 pl.BlockSpec((block_b, 1, L), lambda b, l: (b, 0, 0)),
                 pl.BlockSpec((M, 1), lambda b, l: (b, 0))]
                + [wspec(w) for w in weights])

    out2 = pl.pallas_call(
        kernel,
        out_shape=jax.ShapeDtypeStruct((B * L, Dp), jnp.float32),
        grid=(nb, n_layers),
        in_specs=in_specs,
        out_specs=pl.BlockSpec((M, Dp), lambda b, l: (b, 0)),
        scratch_shapes=[pltpu.VMEM((M, n_head * d_vp), jnp.float32)],
        compiler_params=pltpu.CompilerParams(
            dimension_semantics=("parallel", "arbitrary"),
            vmem_limit_bytes=vmem_limit),
    )(x2, addmask, nonpad2, *weights)
    return out2.reshape(B, L, Dp)


def init_encoder_params(key, *, n_src_vocab, len_max_seq, d_model, n_layers,
                        n_head, d_k, d_v, d_inner):
    d_model_p = _round_up(d_model, LANE)
    d_kp = _round_up(d_k, LANE)
    d_vp = _round_up(d_v, LANE)
    d_inner_p = _round_up(d_inner, LANE)

    keys = jax.random.split(key, 1 + n_layers)

    # word embedding (padding_idx=0 row is zero), zero-padded feature columns
    emb = jax.random.normal(keys[0], (n_src_vocab, d_model), jnp.float32) * 0.02
    emb = emb.at[0].set(0.0)
    emb_p = jnp.zeros((n_src_vocab, d_model_p), jnp.float32).at[:, :d_model].set(emb)

    # sinusoidal positional-encoding table, n_position = len_max_seq + 1
    pos = jnp.arange(len_max_seq + 1, dtype=jnp.float32)[:, None]
    dim = jnp.arange(d_model, dtype=jnp.float32)[None, :]
    angle = pos / jnp.power(10000.0, 2.0 * jnp.floor(dim / 2.0) / d_model)
    pos_table = jnp.where((jnp.arange(d_model)[None, :] % 2) == 0,
                          jnp.sin(angle), jnp.cos(angle)).astype(jnp.float32)
    pos_table_p = (jnp.zeros((len_max_seq + 1, d_model_p), jnp.float32)
                   .at[:, :d_model].set(pos_table))

    def dense(k, fan_in, shape):
        bound = 1.0 / math.sqrt(fan_in)
        return jax.random.uniform(k, shape, jnp.float32, -bound, bound)

    def pad_head_cols(w, d_small, d_pad):
        # (rows, H*d_small) -> (rows, H*d_pad): each head zero-padded to d_pad
        rows = w.shape[0]
        out = jnp.zeros((rows, n_head * d_pad), w.dtype)
        for h in range(n_head):
            out = out.at[:, h * d_pad:h * d_pad + d_small].set(
                w[:, h * d_small:(h + 1) * d_small])
        return out

    def pad2(w, r_pad, c_pad):
        out = jnp.zeros((r_pad, c_pad), w.dtype)
        return out.at[:w.shape[0], :w.shape[1]].set(w)

    stacks = {k: [] for k in ("wqkv", "bqkv", "wo", "w1", "b1", "w2", "vecs")}
    for li in range(n_layers):
        lk = jax.random.split(keys[1 + li], 12)
        wq = dense(lk[0], d_model, (d_model, n_head * d_k))
        bq = dense(lk[1], d_model, (1, n_head * d_k))
        wk = dense(lk[2], d_model, (d_model, n_head * d_k))
        bk = dense(lk[3], d_model, (1, n_head * d_k))
        wv = dense(lk[4], d_model, (d_model, n_head * d_v))
        bv = dense(lk[5], d_model, (1, n_head * d_v))
        wo = dense(lk[6], n_head * d_v, (n_head * d_v, d_model))
        bo = dense(lk[7], n_head * d_v, (1, d_model))
        w1 = dense(lk[8], d_model, (d_model, d_inner))
        b1 = dense(lk[9], d_model, (1, d_inner))
        w2 = dense(lk[10], d_inner, (d_inner, d_model))
        b2 = dense(lk[11], d_inner, (1, d_model))

        # fused + head-padded Q/K/V projection; zero pad rows/cols/biases keep
        # padded q/k/v entries exactly zero (QK^T and P@V stay exact).
        wqkv = jnp.concatenate(
            [pad2(pad_head_cols(wq, d_k, d_kp), d_model_p, n_head * d_kp),
             pad2(pad_head_cols(wk, d_k, d_kp), d_model_p, n_head * d_kp),
             pad2(pad_head_cols(wv, d_v, d_vp), d_model_p, n_head * d_vp)],
            axis=1)
        bqkv = jnp.concatenate([pad_head_cols(bq, d_k, d_kp),
                                pad_head_cols(bk, d_k, d_kp),
                                pad_head_cols(bv, d_v, d_vp)], axis=1)

        wo_p = jnp.zeros((n_head * d_vp, d_model_p), jnp.float32)
        for h in range(n_head):
            wo_p = wo_p.at[h * d_vp:h * d_vp + d_v, :d_model].set(
                wo[h * d_v:(h + 1) * d_v, :])

        w1_p = pad2(w1, d_model_p, d_inner_p)
        b1_p = pad2(b1, 1, d_inner_p)
        w2_p = pad2(w2, d_inner_p, d_model_p)

        pad_row = lambda v: pad2(v, 1, d_model_p)      # zeros beyond d_model
        ln1_g = pad_row(jnp.ones((1, d_model), jnp.float32))
        ln1_b = pad_row(jnp.zeros((1, d_model), jnp.float32))
        ln2_g = pad_row(jnp.ones((1, d_model), jnp.float32))
        ln2_b = pad_row(jnp.zeros((1, d_model), jnp.float32))
        vecs = jnp.concatenate([pad_row(bo), pad_row(b2),
                                ln1_g, ln1_b, ln2_g, ln2_b], axis=0)

        stacks["wqkv"].append(wqkv.astype(jnp.bfloat16))
        stacks["bqkv"].append(bqkv)
        stacks["wo"].append(wo_p.astype(jnp.bfloat16))
        stacks["w1"].append(w1_p.astype(jnp.bfloat16))
        stacks["b1"].append(b1_p)
        stacks["w2"].append(w2_p.astype(jnp.bfloat16))
        stacks["vecs"].append(vecs)

    stacked = {k: jnp.stack(v, axis=0) for k, v in stacks.items()}
    return dict(emb_table=emb_p, pos_table=pos_table_p, stacked=stacked,
                d_model=d_model, d_model_p=d_model_p, n_head=n_head,
                d_k=d_k, d_v=d_v, d_kp=d_kp, d_vp=d_vp, n_layers=n_layers)


def encoder_forward(params, src_seq, src_pos=None, src_seg=None,
                    return_attns=False):
    """Mirrors Encoder.forward (src_pos / src_seg accepted but unused, exactly
    as in the reference forward).  Dropout is identity (eval mode)."""
    del src_pos, src_seg
    B, L = src_seq.shape
    d_model = params["d_model"]

    # masks: additive key-pad mask (0 / -1e9) and multiplicative non-pad mask
    addmask = (jnp.where(src_seq == 0, -1e9, 0.0)
               .astype(jnp.float32)[:, None, :])               # (B, 1, L)
    nonpad = (src_seq != 0).astype(jnp.float32)[:, :, None]    # (B, L, 1)

    # embedding (Embeddings scales by sqrt(d_model)) + sinusoidal positional enc
    emb = params["emb_table"][src_seq] * math.sqrt(d_model)
    x = emb + params["pos_table"][:L][None, :, :]               # (B, L, Dp)

    block_b = _pick_block_b(B, L, _num_tensorcores())
    out_p = encoder_stack_apply(
        x, addmask, nonpad, params["stacked"],
        n_head=params["n_head"], d_k=params["d_k"],
        d_kp=params["d_kp"], d_vp=params["d_vp"],
        d_model=d_model, block_b=block_b, vmem_limit=_vmem_limit_bytes())

    enc_output = out_p[:, :, :d_model]     # drop lane-padding columns
    if return_attns:
        # TODO(synk): per-layer attention maps are not materialized by the fused kernel.
        return (enc_output, [])
    return (enc_output,)


if __name__ == "__main__":
    n_src_vocab, len_max_seq = 50, 16
    d_model, n_layers, n_head, d_k, d_v, d_inner = 32, 2, 4, 8, 8, 64
    B, L = 2, 8

    key = jax.random.PRNGKey(0)
    pkey, dkey = jax.random.split(key)
    params = init_encoder_params(pkey, n_src_vocab=n_src_vocab,
                                 len_max_seq=len_max_seq, d_model=d_model,
                                 n_layers=n_layers, n_head=n_head,
                                 d_k=d_k, d_v=d_v, d_inner=d_inner)

    src_seq = jax.random.randint(dkey, (B, L), 1, n_src_vocab)
    src_seq = src_seq.at[0, 6:].set(0)   # PAD tail to exercise the masks
    src_seq = src_seq.at[1, 5:].set(0)
    src_pos = jnp.arange(1, L + 1, dtype=jnp.int32)[None, :] * (src_seq != 0)
    src_seg = jnp.zeros((B, L), jnp.int32)

    (enc_out,) = encoder_forward(params, src_seq, src_pos, src_seg)
    enc_out = jax.block_until_ready(enc_out)

    assert enc_out.shape == (B, L, d_model)
    assert bool(jnp.all(jnp.isfinite(enc_out)))
    # PAD positions must be zeroed by non_pad_mask
    assert float(jnp.abs(enc_out[0, 6:]).max()) == 0.0
    assert float(jnp.abs(enc_out[1, 5:]).max()) == 0.0
    print("KERNEL_OK")
</pallas_src>

<mosaic_0001>
module attributes {stable_mosaic.version = 11 : i64} {
  func.func @encoder_stack_kernel(%arg0: i32, %arg1: i32, %arg2: memref<16x128xf32, #tpu.memory_space<vmem>>, %arg3: memref<2x1x8xf32, #tpu.memory_space<vmem>>, %arg4: memref<16x1xf32, #tpu.memory_space<vmem>>, %arg5: memref<1x128x1536xbf16, #tpu.memory_space<vmem>>, %arg6: memref<1x1x1536xf32, #tpu.memory_space<vmem>>, %arg7: memref<1x512x128xbf16, #tpu.memory_space<vmem>>, %arg8: memref<1x128x128xbf16, #tpu.memory_space<vmem>>, %arg9: memref<1x1x128xf32, #tpu.memory_space<vmem>>, %arg10: memref<1x128x128xbf16, #tpu.memory_space<vmem>>, %arg11: memref<1x6x128xf32, #tpu.memory_space<vmem>>, %arg12: memref<16x128xf32, #tpu.memory_space<vmem>>, %arg13: memref<16x512xf32, #tpu.memory_space<vmem>>) attributes {dimension_semantics = [#tpu.dimension_semantics<parallel>, #tpu.dimension_semantics<arbitrary>], iteration_bounds = array<i64: 1, 2>, scalar_prefetch = 0 : i64, scratch_operands = 1 : i64, tpu.core_type = #tpu.core_type<tc>, window_params = [{transform_indices = @transform_0, window_bounds = array<i64: 16, 128>}, {transform_indices = @transform_1, window_bounds = array<i64: 2, 1, 8>}, {transform_indices = @transform_2, window_bounds = array<i64: 16, 1>}, {transform_indices = @transform_3, window_bounds = array<i64: 1, 128, 1536>}, {transform_indices = @transform_4, window_bounds = array<i64: 1, 1, 1536>}, {transform_indices = @transform_5, window_bounds = array<i64: 1, 512, 128>}, {transform_indices = @transform_6, window_bounds = array<i64: 1, 128, 128>}, {transform_indices = @transform_7, window_bounds = array<i64: 1, 1, 128>}, {transform_indices = @transform_8, window_bounds = array<i64: 1, 128, 128>}, {transform_indices = @transform_9, window_bounds = array<i64: 1, 6, 128>}, {transform_indices = @transform_10, window_bounds = array<i64: 16, 128>}]} {
    %c0_i32 = arith.constant 0 : i32
    %0 = arith.cmpi eq, %arg1, %c0_i32 : i32
    %1 = arith.extui %0 : i1 to i32
    %c0_i32_0 = arith.constant 0 : i32
    %2 = arith.cmpi ne, %1, %c0_i32_0 : i32
    scf.if %2 {
      %c0_68 = arith.constant 0 : index
      %c0_69 = arith.constant 0 : index
      %196 = vector.load %arg2[%c0_68, %c0_69] : memref<16x128xf32, #tpu.memory_space<vmem>>, vector<16x128xf32>
      %c0_70 = arith.constant 0 : index
      %c0_71 = arith.constant 0 : index
      %197 = vector.load %arg12[%c0_70, %c0_71] : memref<16x128xf32, #tpu.memory_space<vmem>>, vector<16x128xf32>
      tpu.vector_store %arg12[%c0_70, %c0_71], %196 {strides = array<i32>} : memref<16x128xf32, #tpu.memory_space<vmem>>, vector<16x128xf32>,
    } else {
    }
    %c0 = arith.constant 0 : index
    %c0_1 = arith.constant 0 : index
    %3 = vector.load %arg12[%c0, %c0_1] : memref<16x128xf32, #tpu.memory_space<vmem>>, vector<16x128xf32>
    %c0_2 = arith.constant 0 : index
    %c0_3 = arith.constant 0 : index
    %4 = vector.load %arg4[%c0_2, %c0_3] : memref<16x1xf32, #tpu.memory_space<vmem>>, vector<16x1xf32>
    %c0_4 = arith.constant 0 : index
    %c0_5 = arith.constant 0 : index
    %c0_6 = arith.constant 0 : index
    %5 = vector.load %arg3[%c0_4, %c0_5, %c0_6] : memref<2x1x8xf32, #tpu.memory_space<vmem>>, vector<2x1x8xf32>
    %c0_7 = arith.constant 0 : index
    %c0_8 = arith.constant 0 : index
    %c0_9 = arith.constant 0 : index
    %6 = vector.load %arg11[%c0_7, %c0_8, %c0_9] : memref<1x6x128xf32, #tpu.memory_space<vmem>>, vector<1x6x128xf32>
    %7 = vector.shape_cast %6 : vector<1x6x128xf32> to vector<6x128xf32>
    %8 = vector.extract_strided_slice %7 {offsets = [0, 0], sizes = [1, 128], strides = [1, 1]} : vector<6x128xf32> to vector<1x128xf32>
    %9 = vector.extract_strided_slice %7 {offsets = [1, 0], sizes = [1, 128], strides = [1, 1]} : vector<6x128xf32> to vector<1x128xf32>
    %10 = vector.extract_strided_slice %7 {offsets = [2, 0], sizes = [1, 128], strides = [1, 1]} : vector<6x128xf32> to vector<1x128xf32>
    %11 = vector.extract_strided_slice %7 {offsets = [3, 0], sizes = [1, 128], strides = [1, 1]} : vector<6x128xf32> to vector<1x128xf32>
    %12 = vector.extract_strided_slice %7 {offsets = [4, 0], sizes = [1, 128], strides = [1, 1]} : vector<6x128xf32> to vector<1x128xf32>
    %13 = vector.extract_strided_slice %7 {offsets = [5, 0], sizes = [1, 128], strides = [1, 1]} : vector<6x128xf32> to vector<1x128xf32>
    %14 = arith.truncf %3 : vector<16x128xf32> to vector<16x128xbf16>
    %c0_10 = arith.constant 0 : index
    %c0_11 = arith.constant 0 : index
    %c0_12 = arith.constant 0 : index
    %15 = vector.load %arg5[%c0_10, %c0_11, %c0_12] : memref<1x128x1536xbf16, #tpu.memory_space<vmem>>, vector<1x128x1536xbf16>
    %16 = vector.shape_cast %15 : vector<1x128x1536xbf16> to vector<128x1536xbf16>
    %cst = arith.constant dense<0.000000e+00> : vector<16x1536xf32>
    %17 = tpu.matmul %14, %16, %cst {dimension_numbers = #tpu.dot_dimension_numbers<[1], [0], [0], [1], [0, 0, 1, 1], [], []>} : vector<16x128xbf16>, vector<128x1536xbf16>, vector<16x1536xf32> -> vector<16x1536xf32>
    %c0_13 = arith.constant 0 : index
    %c0_14 = arith.constant 0 : index
    %c0_15 = arith.constant 0 : index
    %18 = vector.load %arg6[%c0_13, %c0_14, %c0_15] : memref<1x1x1536xf32, #tpu.memory_space<vmem>>, vector<1x1x1536xf32>
    %19 = vector.shape_cast %18 : vector<1x1x1536xf32> to vector<1x1536xf32>
    %20 = vector.broadcast %19 : vector<1x1536xf32> to vector<16x1536xf32>
    %21 = arith.addf %17, %20 : vector<16x1536xf32>
    %22 = vector.extract_strided_slice %21 {offsets = [0, 0], sizes = [16, 512], strides = [1, 1]} : vector<16x1536xf32> to vector<16x512xf32>
    %cst_16 = arith.constant 0.353553385 : f32
    %23 = vector.broadcast %cst_16 : f32 to vector<16x512xf32>
    %24 = arith.mulf %22, %23 : vector<16x512xf32>
    %25 = vector.shape_cast %24 : vector<16x512xf32> to vector<2x8x512xf32>
    %26 = vector.extract_strided_slice %21 {offsets = [0, 512], sizes = [16, 512], strides = [1, 1]} : vector<16x1536xf32> to vector<16x512xf32>
    %27 = vector.shape_cast %26 : vector<16x512xf32> to vector<2x8x512xf32>
    %28 = vector.extract_strided_slice %21 {offsets = [0, 1024], sizes = [16, 512], strides = [1, 1]} : vector<16x1536xf32> to vector<16x512xf32>
    %29 = vector.shape_cast %28 : vector<16x512xf32> to vector<2x8x512xf32>
    %30 = vector.extract_strided_slice %25 {offsets = [0, 0, 0], sizes = [2, 8, 128], strides = [1, 1, 1]} : vector<2x8x512xf32> to vector<2x8x128xf32>
    %31 = arith.truncf %30 : vector<2x8x128xf32> to vector<2x8x128xbf16>
    %32 = vector.extract_strided_slice %27 {offsets = [0, 0, 0], sizes = [2, 8, 128], strides = [1, 1, 1]} : vector<2x8x512xf32> to vector<2x8x128xf32>
    %33 = arith.truncf %32 : vector<2x8x128xf32> to vector<2x8x128xbf16>
    %34 = vector.extract_strided_slice %29 {offsets = [0, 0, 0], sizes = [2, 8, 128], strides = [1, 1, 1]} : vector<2x8x512xf32> to vector<2x8x128xf32>
    %35 = arith.truncf %34 : vector<2x8x128xf32> to vector<2x8x128xbf16>
    "tpu.trace_start"() <{level = 10 : i32, message = "bqd,bkd->bqk"}> : () -> ()
    %cst_17 = arith.constant dense<0.000000e+00> : vector<2x8x8xf32>
    %36 = tpu.matmul %31, %33, %cst_17 {dimension_numbers = #tpu.dot_dimension_numbers<[2], [2], [1], [1], [0, 0, 0, 1, 1, 1], [0], [0]>} : vector<2x8x128xbf16>, vector<2x8x128xbf16>, vector<2x8x8xf32> -> vector<2x8x8xf32>
    "tpu.trace_stop"() : () -> ()
    %37 = vector.broadcast %5 : vector<2x1x8xf32> to vector<2x8x8xf32>
    %38 = arith.addf %36, %37 : vector<2x8x8xf32>
    %cst_18 = arith.constant dense<0xFF800000> : vector<2x8xf32>
    %39 = vector.multi_reduction <maximumf>, %38, %cst_18 [2] : vector<2x8x8xf32> to vector<2x8xf32>
    %40 = vector.shape_cast %39 : vector<2x8xf32> to vector<2x8x1xf32>
    %41 = vector.broadcast %40 : vector<2x8x1xf32> to vector<2x8x8xf32>
    %42 = arith.subf %38, %41 : vector<2x8x8xf32>
    %43 = math.exp %42 : vector<2x8x8xf32>
    %cst_19 = arith.constant dense<0.000000e+00> : vector<2x8xf32>
    %44 = vector.multi_reduction <add>, %43, %cst_19 [2] : vector<2x8x8xf32> to vector<2x8xf32>
    %45 = vector.shape_cast %44 : vector<2x8xf32> to vector<2x8x1xf32>
    %46 = tpu.reciprocal %45 {approx = true} : vector<2x8x1xf32> -> vector<2x8x1xf32>
    %47 = vector.broadcast %46 : vector<2x8x1xf32> to vector<2x8x8xf32>
    %48 = arith.mulf %43, %47 : vector<2x8x8xf32>
    %49 = arith.truncf %48 : vector<2x8x8xf32> to vector<2x8x8xbf16>
    "tpu.trace_start"() <{level = 10 : i32, message = "bqk,bkd->bqd"}> : () -> ()
    %cst_20 = arith.constant dense<0.000000e+00> : vector<2x8x128xf32>
    %50 = tpu.matmul %49, %35, %cst_20 {dimension_numbers = #tpu.dot_dimension_numbers<[2], [1], [1], [2], [0, 0, 0, 1, 1, 2], [0], [0]>} : vector<2x8x8xbf16>, vector<2x8x128xbf16>, vector<2x8x128xf32> -> vector<2x8x128xf32>
    "tpu.trace_stop"() : () -> ()
    %51 = vector.shape_cast %50 : vector<2x8x128xf32> to vector<16x128xf32>
    %c0_21 = arith.constant 0 : index
    %c0_22 = arith.constant 0 : index
    %52 = vector.load %arg13[%c0_21, %c0_22] : memref<16x512xf32, #tpu.memory_space<vmem>>, vector<16x128xf32>
    tpu.vector_store %arg13[%c0_21, %c0_22], %51 {strides = array<i32>} : memref<16x512xf32, #tpu.memory_space<vmem>>, vector<16x128xf32>,
    %53 = vector.extract_strided_slice %25 {offsets = [0, 0, 128], sizes = [2, 8, 128], strides = [1, 1, 1]} : vector<2x8x512xf32> to vector<2x8x128xf32>
    %54 = arith.truncf %53 : vector<2x8x128xf32> to vector<2x8x128xbf16>
    %55 = vector.extract_strided_slice %27 {offsets = [0, 0, 128], sizes = [2, 8, 128], strides = [1, 1, 1]} : vector<2x8x512xf32> to vector<2x8x128xf32>
    %56 = arith.truncf %55 : vector<2x8x128xf32> to vector<2x8x128xbf16>
    %57 = vector.extract_strided_slice %29 {offsets = [0, 0, 128], sizes = [2, 8, 128], strides = [1, 1, 1]} : vector<2x8x512xf32> to vector<2x8x128xf32>
    %58 = arith.truncf %57 : vector<2x8x128xf32> to vector<2x8x128xbf16>
    "tpu.trace_start"() <{level = 10 : i32, message = "bqd,bkd->bqk"}> : () -> ()
    %cst_23 = arith.constant dense<0.000000e+00> : vector<2x8x8xf32>
    %59 = tpu.matmul %54, %56, %cst_23 {dimension_numbers = #tpu.dot_dimension_numbers<[2], [2], [1], [1], [0, 0, 0, 1, 1, 1], [0], [0]>} : vector<2x8x128xbf16>, vector<2x8x128xbf16>, vector<2x8x8xf32> -> vector<2x8x8xf32>
    "tpu.trace_stop"() : () -> ()
    %60 = vector.broadcast %5 : vector<2x1x8xf32> to vector<2x8x8xf32>
    %61 = arith.addf %59, %60 : vector<2x8x8xf32>
    %cst_24 = arith.constant dense<0xFF800000> : vector<2x8xf32>
    %62 = vector.multi_reduction <maximumf>, %61, %cst_24 [2] : vector<2x8x8xf32> to vector<2x8xf32>
    %63 = vector.shape_cast %62 : vector<2x8xf32> to vector<2x8x1xf32>
    %64 = vector.broadcast %63 : vector<2x8x1xf32> to vector<2x8x8xf32>
    %65 = arith.subf %61, %64 : vector<2x8x8xf32>
    %66 = math.exp %65 : vector<2x8x8xf32>
    %cst_25 = arith.constant dense<0.000000e+00> : vector<2x8xf32>
    %67 = vector.multi_reduction <add>, %66, %cst_25 [2] : vector<2x8x8xf32> to vector<2x8xf32>
    %68 = vector.shape_cast %67 : vector<2x8xf32> to vector<2x8x1xf32>
    %69 = tpu.reciprocal %68 {approx = true} : vector<2x8x1xf32> -> vector<2x8x1xf32>
    %70 = vector.broadcast %69 : vector<2x8x1xf32> to vector<2x8x8xf32>
    %71 = arith.mulf %66, %70 : vector<2x8x8xf32>
    %72 = arith.truncf %71 : vector<2x8x8xf32> to vector<2x8x8xbf16>
    "tpu.trace_start"() <{level = 10 : i32, message = "bqk,bkd->bqd"}> : () -> ()
    %cst_26 = arith.constant dense<0.000000e+00> : vector<2x8x128xf32>
    %73 = tpu.matmul %72, %58, %cst_26 {dimension_numbers = #tpu.dot_dimension_numbers<[2], [1], [1], [2], [0, 0, 0, 1, 1, 2], [0], [0]>} : vector<2x8x8xbf16>, vector<2x8x128xbf16>, vector<2x8x128xf32> -> vector<2x8x128xf32>
    "tpu.trace_stop"() : () -> ()
    %74 = vector.shape_cast %73 : vector<2x8x128xf32> to vector<16x128xf32>
    %c0_27 = arith.constant 0 : index
    %c128 = arith.constant 128 : index
    %75 = vector.load %arg13[%c0_27, %c128] : memref<16x512xf32, #tpu.memory_space<vmem>>, vector<16x128xf32>
    tpu.vector_store %arg13[%c0_27, %c128], %74 {strides = array<i32>} : memref<16x512xf32, #tpu.memory_space<vmem>>, vector<16x128xf32>,
    %76 = vector.extract_strided_slice %25 {offsets = [0, 0, 256], sizes = [2, 8, 128], strides = [1, 1, 1]} : vector<2x8x512xf32> to vector<2x8x128xf32>
    %77 = arith.truncf %76 : vector<2x8x128xf32> to vector<2x8x128xbf16>
    %78 = vector.extract_strided_slice %27 {offsets = [0, 0, 256], sizes = [2, 8, 128], strides = [1, 1, 1]} : vector<2x8x512xf32> to vector<2x8x128xf32>
    %79 = arith.truncf %78 : vector<2x8x128xf32> to vector<2x8x128xbf16>
    %80 = vector.extract_strided_slice %29 {offsets = [0, 0, 256], sizes = [2, 8, 128], strides = [1, 1, 1]} : vector<2x8x512xf32> to vector<2x8x128xf32>
    %81 = arith.truncf %80 : vector<2x8x128xf32> to vector<2x8x128xbf16>
    "tpu.trace_start"() <{level = 10 : i32, message = "bqd,bkd->bqk"}> : () -> ()
    %cst_28 = arith.constant dense<0.000000e+00> : vector<2x8x8xf32>
    %82 = tpu.matmul %77, %79, %cst_28 {dimension_numbers = #tpu.dot_dimension_numbers<[2], [2], [1], [1], [0, 0, 0, 1, 1, 1], [0], [0]>} : vector<2x8x128xbf16>, vector<2x8x128xbf16>, vector<2x8x8xf32> -> vector<2x8x8xf32>
    "tpu.trace_stop"() : () -> ()
    %83 = vector.broadcast %5 : vector<2x1x8xf32> to vector<2x8x8xf32>
    %84 = arith.addf %82, %83 : vector<2x8x8xf32>
    %cst_29 = arith.constant dense<0xFF800000> : vector<2x8xf32>
    %85 = vector.multi_reduction <maximumf>, %84, %cst_29 [2] : vector<2x8x8xf32> to vector<2x8xf32>
    %86 = vector.shape_cast %85 : vector<2x8xf32> to vector<2x8x1xf32>
    %87 = vector.broadcast %86 : vector<2x8x1xf32> to vector<2x8x8xf32>
    %88 = arith.subf %84, %87 : vector<2x8x8xf32>
    %89 = math.exp %88 : vector<2x8x8xf32>
    %cst_30 = arith.constant dense<0.000000e+00> : vector<2x8xf32>
    %90 = vector.multi_reduction <add>, %89, %cst_30 [2] : vector<2x8x8xf32> to vector<2x8xf32>
    %91 = vector.shape_cast %90 : vector<2x8xf32> to vector<2x8x1xf32>
    %92 = tpu.reciprocal %91 {approx = true} : vector<2x8x1xf32> -> vector<2x8x1xf32>
    %93 = vector.broadcast %92 : vector<2x8x1xf32> to vector<2x8x8xf32>
    %94 = arith.mulf %89, %93 : vector<2x8x8xf32>
    %95 = arith.truncf %94 : vector<2x8x8xf32> to vector<2x8x8xbf16>
    "tpu.trace_start"() <{level = 10 : i32, message = "bqk,bkd->bqd"}> : () -> ()
    %cst_31 = arith.constant dense<0.000000e+00> : vector<2x8x128xf32>
    %96 = tpu.matmul %95, %81, %cst_31 {dimension_numbers = #tpu.dot_dimension_numbers<[2], [1], [1], [2], [0, 0, 0, 1, 1, 2], [0], [0]>} : vector<2x8x8xbf16>, vector<2x8x128xbf16>, vector<2x8x128xf32> -> vector<2x8x128xf32>
    "tpu.trace_stop"() : () -> ()
    %97 = vector.shape_cast %96 : vector<2x8x128xf32> to vector<16x128xf32>
    %c0_32 = arith.constant 0 : index
    %c256 = arith.constant 256 : index
    %98 = vector.load %arg13[%c0_32, %c256] : memref<16x512xf32, #tpu.memory_space<vmem>>, vector<16x128xf32>
    tpu.vector_store %arg13[%c0_32, %c256], %97 {strides = array<i32>} : memref<16x512xf32, #tpu.memory_space<vmem>>, vector<16x128xf32>,
    %99 = vector.extract_strided_slice %25 {offsets = [0, 0, 384], sizes = [2, 8, 128], strides = [1, 1, 1]} : vector<2x8x512xf32> to vector<2x8x128xf32>
    %100 = arith.truncf %99 : vector<2x8x128xf32> to vector<2x8x128xbf16>
    %101 = vector.extract_strided_slice %27 {offsets = [0, 0, 384], sizes = [2, 8, 128], strides = [1, 1, 1]} : vector<2x8x512xf32> to vector<2x8x128xf32>
    %102 = arith.truncf %101 : vector<2x8x128xf32> to vector<2x8x128xbf16>
    %103 = vector.extract_strided_slice %29 {offsets = [0, 0, 384], sizes = [2, 8, 128], strides = [1, 1, 1]} : vector<2x8x512xf32> to vector<2x8x128xf32>
    %104 = arith.truncf %103 : vector<2x8x128xf32> to vector<2x8x128xbf16>
    "tpu.trace_start"() <{level = 10 : i32, message = "bqd,bkd->bqk"}> : () -> ()
    %cst_33 = arith.constant dense<0.000000e+00> : vector<2x8x8xf32>
    %105 = tpu.matmul %100, %102, %cst_33 {dimension_numbers = #tpu.dot_dimension_numbers<[2], [2], [1], [1], [0, 0, 0, 1, 1, 1], [0], [0]>} : vector<2x8x128xbf16>, vector<2x8x128xbf16>, vector<2x8x8xf32> -> vector<2x8x8xf32>
    "tpu.trace_stop"() : () -> ()
    %106 = vector.broadcast %5 : vector<2x1x8xf32> to vector<2x8x8xf32>
    %107 = arith.addf %105, %106 : vector<2x8x8xf32>
    %cst_34 = arith.constant dense<0xFF800000> : vector<2x8xf32>
    %108 = vector.multi_reduction <maximumf>, %107, %cst_34 [2] : vector<2x8x8xf32> to vector<2x8xf32>
    %109 = vector.shape_cast %108 : vector<2x8xf32> to vector<2x8x1xf32>
    %110 = vector.broadcast %109 : vector<2x8x1xf32> to vector<2x8x8xf32>
    %111 = arith.subf %107, %110 : vector<2x8x8xf32>
    %112 = math.exp %111 : vector<2x8x8xf32>
    %cst_35 = arith.constant dense<0.000000e+00> : vector<2x8xf32>
    %113 = vector.multi_reduction <add>, %112, %cst_35 [2] : vector<2x8x8xf32> to vector<2x8xf32>
    %114 = vector.shape_cast %113 : vector<2x8xf32> to vector<2x8x1xf32>
    %115 = tpu.reciprocal %114 {approx = true} : vector<2x8x1xf32> -> vector<2x8x1xf32>
    %116 = vector.broadcast %115 : vector<2x8x1xf32> to vector<2x8x8xf32>
    %117 = arith.mulf %112, %116 : vector<2x8x8xf32>
    %118 = arith.truncf %117 : vector<2x8x8xf32> to vector<2x8x8xbf16>
    "tpu.trace_start"() <{level = 10 : i32, message = "bqk,bkd->bqd"}> : () -> ()
    %cst_36 = arith.constant dense<0.000000e+00> : vector<2x8x128xf32>
    %119 = tpu.matmul %118, %104, %cst_36 {dimension_numbers = #tpu.dot_dimension_numbers<[2], [1], [1], [2], [0, 0, 0, 1, 1, 2], [0], [0]>} : vector<2x8x8xbf16>, vector<2x8x128xbf16>, vector<2x8x128xf32> -> vector<2x8x128xf32>
    "tpu.trace_stop"() : () -> ()
    %120 = vector.shape_cast %119 : vector<2x8x128xf32> to vector<16x128xf32>
    %c0_37 = arith.constant 0 : index
    %c384 = arith.constant 384 : index
    %121 = vector.load %arg13[%c0_37, %c384] : memref<16x512xf32, #tpu.memory_space<vmem>>, vector<16x128xf32>
    tpu.vector_store %arg13[%c0_37, %c384], %120 {strides = array<i32>} : memref<16x512xf32, #tpu.memory_space<vmem>>, vector<16x128xf32>,
    %c0_38 = arith.constant 0 : index
    %c0_39 = arith.constant 0 : index
    %122 = vector.load %arg13[%c0_38, %c0_39] : memref<16x512xf32, #tpu.memory_space<vmem>>, vector<16x512xf32>
    %123 = arith.truncf %122 : vector<16x512xf32> to vector<16x512xbf16>
    %c0_40 = arith.constant 0 : index
    %c0_41 = arith.constant 0 : index
    %c0_42 = arith.constant 0 : index
    %124 = vector.load %arg7[%c0_40, %c0_41, %c0_42] : memref<1x512x128xbf16, #tpu.memory_space<vmem>>, vector<1x512x128xbf16>
    %125 = vector.shape_cast %124 : vector<1x512x128xbf16> to vector<512x128xbf16>
    %cst_43 = arith.constant dense<0.000000e+00> : vector<16x128xf32>
    %126 = tpu.matmul %123, %125, %cst_43 {dimension_numbers = #tpu.dot_dimension_numbers<[1], [0], [0], [1], [0, 0, 1, 1], [], []>} : vector<16x512xbf16>, vector<512x128xbf16>, vector<16x128xf32> -> vector<16x128xf32>
    %127 = vector.broadcast %8 : vector<1x128xf32> to vector<16x128xf32>
    %128 = arith.addf %126, %127 : vector<16x128xf32>
    %129 = arith.addf %128, %3 : vector<16x128xf32>
    %cst_44 = arith.constant dense<0.000000e+00> : vector<16xf32>
    %130 = vector.multi_reduction <add>, %129, %cst_44 [1] : vector<16x128xf32> to vector<16xf32>
    %131 = vector.shape_cast %130 : vector<16xf32> to vector<16x1xf32>
    %cst_45 = arith.constant 3.125000e-02 : f32
    %132 = vector.broadcast %cst_45 : f32 to vector<16x1xf32>
    %133 = arith.mulf %131, %132 : vector<16x1xf32>
    %134 = arith.mulf %129, %129 : vector<16x128xf32>
    %cst_46 = arith.constant dense<0.000000e+00> : vector<16xf32>
    %135 = vector.multi_reduction <add>, %134, %cst_46 [1] : vector<16x128xf32> to vector<16xf32>
    %136 = vector.shape_cast %135 : vector<16xf32> to vector<16x1xf32>
    %cst_47 = arith.constant 3.125000e-02 : f32
    %137 = vector.broadcast %cst_47 : f32 to vector<16x1xf32>
    %138 = arith.mulf %136, %137 : vector<16x1xf32>
    %139 = arith.mulf %133, %133 : vector<16x1xf32>
    %140 = arith.subf %138, %139 : vector<16x1xf32>
    %141 = vector.broadcast %133 : vector<16x1xf32> to vector<16x128xf32>
    %142 = arith.subf %129, %141 : vector<16x128xf32>
    %cst_48 = arith.constant 9.99999974E-6 : f32
    %143 = vector.broadcast %cst_48 : f32 to vector<16x1xf32>
    %144 = arith.addf %140, %143 : vector<16x1xf32>
    %145 = math.rsqrt %144 : vector<16x1xf32>
    %146 = vector.broadcast %145 : vector<16x1xf32> to vector<16x128xf32>
    %147 = arith.mulf %142, %146 : vector<16x128xf32>
    %148 = vector.broadcast %10 : vector<1x128xf32> to vector<16x128xf32>
    %149 = arith.mulf %147, %148 : vector<16x128xf32>
    %150 = vector.broadcast %11 : vector<1x128xf32> to vector<16x128xf32>
    %151 = arith.addf %149, %150 : vector<16x128xf32>
    %152 = vector.broadcast %4 : vector<16x1xf32> to vector<16x128xf32>
    %153 = arith.mulf %151, %152 : vector<16x128xf32>
    %154 = arith.truncf %153 : vector<16x128xf32> to vector<16x128xbf16>
    %c0_49 = arith.constant 0 : index
    %c0_50 = arith.constant 0 : index
    %c0_51 = arith.constant 0 : index
    %155 = vector.load %arg8[%c0_49, %c0_50, %c0_51] : memref<1x128x128xbf16, #tpu.memory_space<vmem>>, vector<1x128x128xbf16>
    %156 = vector.shape_cast %155 : vector<1x128x128xbf16> to vector<128x128xbf16>
    %cst_52 = arith.constant dense<0.000000e+00> : vector<16x128xf32>
    %157 = tpu.matmul %154, %156, %cst_52 {dimension_numbers = #tpu.dot_dimension_numbers<[1], [0], [0], [1], [0, 0, 1, 1], [], []>} : vector<16x128xbf16>, vector<128x128xbf16>, vector<16x128xf32> -> vector<16x128xf32>
    %c0_53 = arith.constant 0 : index
    %c0_54 = arith.constant 0 : index
    %c0_55 = arith.constant 0 : index
    %158 = vector.load %arg9[%c0_53, %c0_54, %c0_55] : memref<1x1x128xf32, #tpu.memory_space<vmem>>, vector<1x1x128xf32>
    %159 = vector.shape_cast %158 : vector<1x1x128xf32> to vector<1x128xf32>
    %160 = vector.broadcast %159 : vector<1x128xf32> to vector<16x128xf32>
    %161 = arith.addf %157, %160 : vector<16x128xf32>
    %cst_56 = arith.constant 0.000000e+00 : f32
    %162 = vector.broadcast %cst_56 : f32 to vector<16x128xf32>
    %163 = arith.maximumf %161, %162 : vector<16x128xf32>
    %164 = arith.truncf %163 : vector<16x128xf32> to vector<16x128xbf16>
    %c0_57 = arith.constant 0 : index
    %c0_58 = arith.constant 0 : index
    %c0_59 = arith.constant 0 : index
    %165 = vector.load %arg10[%c0_57, %c0_58, %c0_59] : memref<1x128x128xbf16, #tpu.memory_space<vmem>>, vector<1x128x128xbf16>
    %166 = vector.shape_cast %165 : vector<1x128x128xbf16> to vector<128x128xbf16>
    %cst_60 = arith.constant dense<0.000000e+00> : vector<16x128xf32>
    %167 = tpu.matmul %164, %166, %cst_60 {dimension_numbers = #tpu.dot_dimension_numbers<[1], [0], [0], [1], [0, 0, 1, 1], [], []>} : vector<16x128xbf16>, vector<128x128xbf16>, vector<16x128xf32> -> vector<16x128xf32>
    %168 = vector.broadcast %9 : vector<1x128xf32> to vector<16x128xf32>
    %169 = arith.addf %167, %168 : vector<16x128xf32>
    %170 = arith.addf %169, %153 : vector<16x128xf32>
    %cst_61 = arith.constant dense<0.000000e+00> : vector<16xf32>
    %171 = vector.multi_reduction <add>, %170, %cst_61 [1] : vector<16x128xf32> to vector<16xf32>
    %172 = vector.shape_cast %171 : vector<16xf32> to vector<16x1xf32>
    %cst_62 = arith.constant 3.125000e-02 : f32
    %173 = vector.broadcast %cst_62 : f32 to vector<16x1xf32>
    %174 = arith.mulf %172, %173 : vector<16x1xf32>
    %175 = arith.mulf %170, %170 : vector<16x128xf32>
    %cst_63 = arith.constant dense<0.000000e+00> : vector<16xf32>
    %176 = vector.multi_reduction <add>, %175, %cst_63 [1] : vector<16x128xf32> to vector<16xf32>
    %177 = vector.shape_cast %176 : vector<16xf32> to vector<16x1xf32>
    %cst_64 = arith.constant 3.125000e-02 : f32
    %178 = vector.broadcast %cst_64 : f32 to vector<16x1xf32>
    %179 = arith.mulf %177, %178 : vector<16x1xf32>
    %180 = arith.mulf %174, %174 : vector<16x1xf32>
    %181 = arith.subf %179, %180 : vector<16x1xf32>
    %182 = vector.broadcast %174 : vector<16x1xf32> to vector<16x128xf32>
    %183 = arith.subf %170, %182 : vector<16x128xf32>
    %cst_65 = arith.constant 9.99999974E-6 : f32
    %184 = vector.broadcast %cst_65 : f32 to vector<16x1xf32>
    %185 = arith.addf %181, %184 : vector<16x1xf32>
    %186 = math.rsqrt %185 : vector<16x1xf32>
    %187 = vector.broadcast %186 : vector<16x1xf32> to vector<16x128xf32>
    %188 = arith.mulf %183, %187 : vector<16x128xf32>
    %189 = vector.broadcast %12 : vector<1x128xf32> to vector<16x128xf32>
    %190 = arith.mulf %188, %189 : vector<16x128xf32>
    %191 = vector.broadcast %13 : vector<1x128xf32> to vector<16x128xf32>
    %192 = arith.addf %190, %191 : vector<16x128xf32>
    %193 = vector.broadcast %4 : vector<16x1xf32> to vector<16x128xf32>
    %194 = arith.mulf %192, %193 : vector<16x128xf32>
    %c0_66 = arith.constant 0 : index
    %c0_67 = arith.constant 0 : index
    %195 = vector.load %arg12[%c0_66, %c0_67] : memref<16x128xf32, #tpu.memory_space<vmem>>, vector<16x128xf32>
    tpu.vector_store %arg12[%c0_66, %c0_67], %194 {strides = array<i32>} : memref<16x128xf32, #tpu.memory_space<vmem>>, vector<16x128xf32>,
    return
  }
  func.func @transform_0(%arg0: i32, %arg1: i32) -> (i32, i32) {
    %c0_i32 = arith.constant 0 : i32
    %c0_i32_0 = arith.constant 0 : i32
    return %arg0, %c0_i32 : i32, i32
  }
  func.func @transform_1(%arg0: i32, %arg1: i32) -> (i32, i32, i32) {
    %c0_i32 = arith.constant 0 : i32
    %c0_i32_0 = arith.constant 0 : i32
    %c0_i32_1 = arith.constant 0 : i32
    return %arg0, %c0_i32, %c0_i32_0 : i32, i32, i32
  }
  func.func @transform_2(%arg0: i32, %arg1: i32) -> (i32, i32) {
    %c0_i32 = arith.constant 0 : i32
    %c0_i32_0 = arith.constant 0 : i32
    return %arg0, %c0_i32 : i32, i32
  }
  func.func @transform_3(%arg0: i32, %arg1: i32) -> (i32, i32, i32) {
    %c0_i32 = arith.constant 0 : i32
    %c0_i32_0 = arith.constant 0 : i32
    %c0_i32_1 = arith.constant 0 : i32
    return %arg1, %c0_i32, %c0_i32_0 : i32, i32, i32
  }
  func.func @transform_4(%arg0: i32, %arg1: i32) -> (i32, i32, i32) {
    %c0_i32 = arith.constant 0 : i32
    %c0_i32_0 = arith.constant 0 : i32
    %c0_i32_1 = arith.constant 0 : i32
    return %arg1, %c0_i32, %c0_i32_0 : i32, i32, i32
  }
  func.func @transform_5(%arg0: i32, %arg1: i32) -> (i32, i32, i32) {
    %c0_i32 = arith.constant 0 : i32
    %c0_i32_0 = arith.constant 0 : i32
    %c0_i32_1 = arith.constant 0 : i32
    return %arg1, %c0_i32, %c0_i32_0 : i32, i32, i32
  }
  func.func @transform_6(%arg0: i32, %arg1: i32) -> (i32, i32, i32) {
    %c0_i32 = arith.constant 0 : i32
    %c0_i32_0 = arith.constant 0 : i32
    %c0_i32_1 = arith.constant 0 : i32
    return %arg1, %c0_i32, %c0_i32_0 : i32, i32, i32
  }
  func.func @transform_7(%arg0: i32, %arg1: i32) -> (i32, i32, i32) {
    %c0_i32 = arith.constant 0 : i32
    %c0_i32_0 = arith.constant 0 : i32
    %c0_i32_1 = arith.constant 0 : i32
    return %arg1, %c0_i32, %c0_i32_0 : i32, i32, i32
  }
  func.func @transform_8(%arg0: i32, %arg1: i32) -> (i32, i32, i32) {
    %c0_i32 = arith.constant 0 : i32
    %c0_i32_0 = arith.constant 0 : i32
    %c0_i32_1 = arith.constant 0 : i32
    return %arg1, %c0_i32, %c0_i32_0 : i32, i32, i32
  }
  func.func @transform_9(%arg0: i32, %arg1: i32) -> (i32, i32, i32) {
    %c0_i32 = arith.constant 0 : i32
    %c0_i32_0 = arith.constant 0 : i32
    %c0_i32_1 = arith.constant 0 : i32
    return %arg1, %c0_i32, %c0_i32_0 : i32, i32, i32
  }
  func.func @transform_10(%arg0: i32, %arg1: i32) -> (i32, i32) {
    %c0_i32 = arith.constant 0 : i32
    %c0_i32_0 = arith.constant 0 : i32
    return %arg0, %c0_i32 : i32, i32
  }
}

</mosaic_0001>

<bundles_post_ra>
// kernel: tpu_custom_call.1
= control target key start
LH: loop header
LB: loop body
LE: loop exit
PB: predicated region body
PF: predicated region fallthrough
CT: control target
= control target key end

     0   :  { %s5103_s0 = inlined_call_operand.vmem [shape: f32[16,128], index: 0, kind: input, shape index: {}]   ;;  %s5104_s1 = inlined_call_operand.hbm [shape: f32[2,1,8], index: 1, kind: input, shape index: {}]   ;;  %s5105_s2 = inlined_call_operand.vmem [shape: f32[16,1], index: 2, kind: input, shape index: {}]   ;;  %s5106_s3 = inlined_call_operand.hbm [shape: bf16[2,128,1536], index: 3, kind: input, shape index: {}]   ;;  %s5107_s4 = inlined_call_operand.vmem [shape: f32[2,1,1536], index: 4, kind: input, shape index: {}]   ;;  %s5108_s5 = inlined_call_operand.hbm [shape: bf16[2,512,128], index: 5, kind: input, shape index: {}]   ;;  %s5109_s6 = inlined_call_operand.hbm [shape: bf16[2,128,128], index: 6, kind: input, shape index: {}]   ;;  %s5110_s7 = inlined_call_operand.vmem [shape: f32[2,1,128], index: 7, kind: input, shape index: {}]   ;;  %s5111_s8 = inlined_call_operand.hbm [shape: bf16[2,128,128], index: 8, kind: input, shape index: {}]   ;;  %s5112_s9 = inlined_call_operand.vmem [shape: f32[2,6,128], index: 9, kind: input, shape index: {}]   ;;  %s5113_s10 = inlined_call_operand.hbm [shape: f32[16,128], index: 10, kind: output, shape index: {}]  }
   0x1   :  { %5134 = sst [smem:[#allocation22_spill]] %s5103_s0 }
   0x2   :  { %5135 = sst [smem:[#allocation23_spill]] %s5105_s2 }
   0x3   :  { %5136 = sst [smem:[#allocation24_spill]] %s5106_s3 }
   0x4   :  { %5137 = sst [smem:[#allocation25_spill]] %s5109_s6 }
   0x5   :  { %5138 = sst [smem:[#allocation26_spill]] %s5113_s10 }
   0x6   :  { %15 = vsyncpa [#allocation4], 0 }
   0x7   :  { %16 = vsyncpa [#allocation7], 0 }
   0x8   :  { %18 = vsyncpa [#allocation7 + $0x1], 0 }
   0x9   :  { %19 = vsyncpa [#allocation10], 0 }
   0xa   :  { %21 = vsyncpa [#allocation10 + $0x1], 0 }
   0xb   :  { %22 = vsyncpa [#allocation5], 0  ;;  %s4319_s13 = smov 0   ;;  %s4321_s14 = smov 0  }
   0xc   :  { %s4323_s15 = smov 0   ;;  %s4325_s16 = smov 0  }
   0xd   :  { %s4327_s17 = smov 0   ;;  %s4329_s18 = smov 0  }
   0xe LB: > { %5139 = sst [smem:[#allocation17_spill]] %s4233_s15  ;;  %s37_s19 = sadd.s32 1, %s4241_s17  ;;  %s4245_s18 = sphi %s4329_s18, %s28_s18   ;;  %s4241_s17 = sphi %s4327_s17, %s5171_s17   ;;  %s4237_s16 = sphi %s4325_s16, %s5167_s16   ;;  %s4233_s15 = sphi %s4323_s15, %s5166_s15   ;;  %s4229_s14 = sphi %s4321_s14, %s5170_s14   ;;  %s4225_s13 = sphi %s4319_s13, %s5169_s13  }
   0xf   : > { %5140 = sst [smem:[#allocation18_spill]] %s4241_s17  ;;  %s125_s20 = sadd.s32 1, %s4233_s15 }
  0x10   : > { %5141 = sst [smem:[#allocation19_spill]] %s4245_s18  ;;  %p38_p0 = scmp.ge.s32.totalorder %s37_s19, 2 }
  0x11   : > { %p132_p1 = scmp.ne.s32.totalorder %s4233_s15, %s4229_s14  ;;  %p133_p2 = scmp.eq.s32.totalorder %s4245_s18, 0 }
  0x12   : > { %s5173_s19 = smov (%p38_p0, %s37_s19), 0  ;;  %p3708_p4 = scmp.lt.s32.totalorder %s4245_s18, 2 }
  0x13   : > { %5142 = sst [smem:[#allocation20_spill]] %s5173_s19  ;;  %p134_p3 = por %p133_p2, %p132_p1 }
  0x14   : > { %s122_s21 = ssub.s32 %s4241_s17, %s5173_s19  ;;  %s5115_s22 = sand.u32 1, %s4245_s18  }
  0x15   : > { %p123_p5 = scmp.eq.s32.totalorder %s122_s21, 0  ;;  %s4361_s23 = sand.u32 1, %s4233_s15  }
  0x16   : > { %s3671_s24 = smul.u32 12288, %s4241_s17  ;;  %s5144_s3 = sld [smem:[#allocation24_spill]] }
  0x17   : > { %s4365_s25 = scalar_select %p123_p5, %s4233_s15, %s125_s20  }
  0x18   : > { %s3670_s26 = smul.u32 768, %s4361_s23  ;;  %p4373_p6 = pnand %p3708_p4, %p134_p3 }
  0x19   : > { %5143 = sst [smem:[#allocation21_spill]] %s4365_s25  ;;  %s4381_s20 = scalar_lea.sflag [#allocation7], %s5115_s22 }
  0x1a   : > { %s5145_s30 = scalar_select %p4373_p6, 1, 0 }
  0x1b   : > { %s382_s11 = scalar_lea.vmem [#allocation6], %s3670_s26  ;;  %p4387_p8 = pneg %p4373_p6 }
  0x1c   : > { %s4371_s29 = scalar_lea.hbm %s5144_s3, %s3671_s24  ;;  %s389_s12 = sshll.u32 %s382_s11, 4  ;;  %s4377_s12 = int_to_ptr.vmem [resolvable:$true] %s389_s12 }
  0x1d   : > { %s4009_s21 = scalar_lea.hbm %s4371_s29, 12288  ;;  %s4014_s26 = scalar_lea.hbm %s5144_s3, 24576 }
  0x1e   : > { %p4010_p7 = scmp.ne.s32.totalorder %s4371_s29, %s4009_s21  ;;  %p4015_p11 = scmp.lt.u32.totalorder %s4371_s29, %s5144_s3 }
  0x1f   : > { %s5146_s24 = scalar_select %p4387_p8, 1, 0 }
  0x20   : > { %p4012_p9 = pnand %p4387_p8, %p4010_p7  ;;  %p4016_p12 = scmp.lt.u32.totalorder %s4014_s26, %s4009_s21 }
  0x21   : > { %p4018_p0 = scmp.lt.u32.totalorder %s4009_s21, %s4371_s29 }
  0x22   : > { %p4013_p10 = pneg %p4012_p9  ;;  %p4017_p13 = por %p4016_p12, %p4015_p11 }
  0x24   : > { %p4019_p1 = por %p4018_p0, %p4017_p13 }
  0x26   : > { %p4020_p2 = pnand %p4019_p1, %p4013_p10 }
  0x28   : > { %4023 = shalt.err (!%p4020_p2)
}
  0x29   : > { %s4024_s22 = scalar_lea.vmem %s4377_s12, 12288  ;;  %s4247_s27 = smov [#allocation6]  }
  0x2a   : > { %p4025_p3 = scmp.ne.s32.totalorder %s4377_s12, %s4024_s22  ;;  %s4029_s28 = sshll.u32 %s4247_s27, 4  ;;  %s4030_s28 = int_to_ptr.vmem [resolvable:$false] %s4029_s28 }
  0x2b   : > { %s4031_s19 = scalar_lea.vmem %s4030_s28, 24576  ;;  %p4032_p7 = scmp.lt.s32.totalorder %s4377_s12, %s4030_s28 }
  0x2c   : > { %p4027_p4 = pnand %p4025_p3, %p4387_p8  ;;  %p4033_p9 = scmp.lt.s32.totalorder %s4031_s19, %s4024_s22 }
  0x2e   : > { %p4028_p5 = pneg %p4027_p4  ;;  %p4034_p11 = por %p4033_p9, %p4032_p7 }
  0x30   : > { %p4035_p12 = pnand %p4034_p11, %p4028_p5 }
  0x32   : > { %4038 = shalt.err (!%p4035_p12)
}
  0x33   : > { %s4248_s21 = smov 768   ;;  %s4249_s26 = smov 48  }
  0x34   : > { %3697 = dma.hbm_to_vmem [thread:$0]  (!%p4373_p6), %s4371_s29, 12288, %s4377_s12, %s4381_s20, %s4248_s21, %s4248_s21, %s4249_s26  }
  0x35   : > { %s5118_s11 = sshll.u32 %s4361_s23, 6  ;;  %s3438_s27 = sshll.u32 %s4241_s17, 10 }
  0x36   : > { %s5147_s6 = sld [smem:[#allocation25_spill]]  ;;  %s431_s3 = scalar_lea.vmem [#allocation9], %s5118_s11 }
  0x37   : > { %s438_s25 = sshll.u32 %s431_s3, 4  ;;  %s4425_s29 = scalar_lea.hbm %s5111_s8, %s3438_s27  ;;  %s4420_s25 = int_to_ptr.vmem [resolvable:$true] %s438_s25 }
  0x38   : > { %s5148_s12 = sand.u32 1, %s4245_s18  }
  0x39   : > { %s4429_s21 = scalar_lea.sflag [#allocation10], %s5148_s12 }
  0x3c   : > { %s4416_s19 = scalar_lea.hbm %s5147_s6, %s3438_s27  ;;  %s4044_s11 = scalar_lea.hbm %s5147_s6, 2048 }
  0x3d   : > { %s4039_s26 = scalar_lea.hbm %s4416_s19, 1024  ;;  %p4045_p1 = scmp.lt.u32.totalorder %s4416_s19, %s5147_s6 }
  0x3e   : > { %p4040_p10 = scmp.ne.s32.totalorder %s4416_s19, %s4039_s26  ;;  %p4046_p2 = scmp.lt.u32.totalorder %s4044_s11, %s4039_s26 }
  0x3f   : > { %p4048_p4 = scmp.lt.u32.totalorder %s4039_s26, %s4416_s19 }
  0x40   : > { %p4042_p13 = pnand %p4040_p10, %p4387_p8  ;;  %p4047_p3 = por %p4046_p2, %p4045_p1 }
  0x42   : > { %p4043_p0 = pneg %p4042_p13  ;;  %p4049_p5 = por %p4048_p4, %p4047_p3 }
  0x44   : > { %p4050_p7 = pnand %p4049_p5, %p4043_p0 }
  0x46   : > { %4053 = shalt.err (!%p4050_p7)
}
  0x47   : > { %s4054_s10 = scalar_lea.vmem %s4420_s25, 1024  ;;  %s4250_s15 = smov [#allocation9]  }
  0x48   : > { %p4055_p9 = scmp.ne.s32.totalorder %s4420_s25, %s4054_s10  ;;  %s4059_s27 = sshll.u32 %s4250_s15, 4  ;;  %s4060_s27 = int_to_ptr.vmem [resolvable:$false] %s4059_s27 }
  0x49   : > { %s4061_s2 = scalar_lea.vmem %s4060_s27, 2048  ;;  %p4062_p10 = scmp.lt.s32.totalorder %s4420_s25, %s4060_s27 }
  0x4a   : > { %p4057_p11 = pnand %p4055_p9, %p4387_p8  ;;  %p4063_p13 = scmp.lt.s32.totalorder %s4061_s2, %s4054_s10 }
  0x4c   : > { %p4058_p12 = pneg %p4057_p11  ;;  %p4064_p1 = por %p4063_p13, %p4062_p10 }
  0x4e   : > { %p4065_p2 = pnand %p4064_p1, %p4058_p12 }
  0x50   : > { %4068 = shalt.err (!%p4065_p2)
}
  0x51   : > { %s5120_s11 = smov 64   ;;  %s5122_s12 = smov 4  }
  0x52   : > { %3703 = dma.hbm_to_vmem [thread:$0]  (!%p4373_p6), %s4416_s19, 1024, %s4420_s25, %s4429_s21, %s5120_s11, %s5120_s11, %s5122_s12  }
  0x53   : > { %s5149_s26 = sshll.u32 %s4361_s23, 6  ;;  %s4461_s3 = sadd.s32 4294967295, %s4245_s18  }
  0x54   : > { %s458_s28 = scalar_lea.vmem [#allocation11], %s5149_s26  ;;  %p138_p0 = scmp.ne.s32.totalorder %s4229_s14, %s4225_s13 }
  0x55   : > { %s465_s22 = sshll.u32 %s458_s28, 4  ;;  %p5127_p3 = scmp.eq.s32.totalorder %s4461_s3, 0  ;;  %s4458_s22 = int_to_ptr.vmem [resolvable:$true] %s465_s22 }
  0x56   : > { %p3256_p4 = scmp.ge.s32.totalorder %s4245_s18, 1  ;;  %p331_p5 = scmp.lt.s32.totalorder %s4245_s18, 3 }
  0x57   : > { %p4470_p7 = por %p5127_p3, %p138_p0  ;;  %s4253_s19 = smov [#allocation3]  }
  0x58   : > { %p4474_p9 = pnand %p3256_p4, %p331_p5  ;;  %s355_s15 = sshll.u32 %s4253_s19, 4  ;;  %s4478_s15 = int_to_ptr.vmem [resolvable:$true] %s355_s15 }
  0x59   : > { %s5150_s10 = scalar_select %p4470_p7, 1, 0 }
  0x5a   : > { %s5151_s25 = scalar_select %p4474_p9, 1, 0 }
  0x5b   : > { %p3690_p11 = pneg %p4474_p9  ;;  %s3262_s13 = sshll.u32 %s4361_s23, 8 }
  0x5c   : > { %s3437_s27 = sshll.u32 %s4241_s17, 12  ;;  %s410_s12 = scalar_lea.vmem [#allocation8], %s3262_s13 }
  0x5d   : > { %p4486_p12 = pnand %p3690_p11, %p5127_p3  ;;  %s4493_s11 = scalar_lea.hbm %s5108_s5, %s3437_s27 }
  0x5e   : > { %s417_s6 = sshll.u32 %s410_s12, 4  ;;  %s4069_s23 = scalar_lea.hbm %s5104_s1, 32  ;;  %s4495_s6 = int_to_ptr.vmem [resolvable:$true] %s417_s6 }
  0x5f   : > { %p4070_p10 = scmp.ne.s32.totalorder %s5104_s1, %s4069_s23  ;;  %p4071_p13 = pneg %p4486_p12 }
  0x60   : > { %p4076_p0 = scmp.lt.u32.totalorder %s4069_s23, %s5104_s1 }
  0x61   : > { %p4072_p1 = pnand %p4071_p13, %p4070_p10 }
  0x63   : > { %p4073_p2 = pneg %p4072_p1 }
  0x65   : > { %p4078_p4 = pnand %p4076_p0, %p4073_p2 }
  0x67   : > { %4081 = shalt.err (!%p4078_p4)
}
  0x68   : > { %s4082_s12 = scalar_lea.vmem %s4478_s15, 32  ;;  %p4090_p7 = scmp.lt.s32.totalorder %s4478_s15, %s4478_s15 }
  0x69   : > { %p4083_p5 = scmp.ne.s32.totalorder %s4478_s15, %s4082_s12  ;;  %p4091_p9 = scmp.lt.s32.totalorder %s4082_s12, %s4082_s12 }
  0x6b   : > { %p4085_p11 = pnand %p4083_p5, %p4071_p13  ;;  %p4092_p6 = por %p4091_p9, %p4090_p7 }
  0x6d   : > { %p4086_p3 = pneg %p4085_p11 }
  0x6f   : > { %p4093_p8 = pnand %p4092_p6, %p4086_p3 }
  0x71   : > { %4096 = shalt.err (!%p4093_p8)
}
  0x72   : > { %s4254_s0 = smov 16   ;;  %s4255_s17 = smov 1  }
  0x73   : > { %3693 = dma.hbm_to_vmem [thread:$0]  (!%p4486_p12), %s5104_s1, 32, %s4478_s15, [#allocation4], %s4254_s0, %s4254_s0, %s4255_s17  }
  0x74   : > { %s4097_s27 = scalar_lea.hbm %s4493_s11, 4096  ;;  %p5153_p13 = scmp.ne.s32.totalorder %s5146_s24, 0 }
  0x75   : > { %p4098_p10 = scmp.ne.s32.totalorder %s4493_s11, %s4097_s27  ;;  %s4102_s26 = scalar_lea.hbm %s5108_s5, 8192 }
  0x76   : > { %p4103_p8 = scmp.lt.u32.totalorder %s4493_s11, %s5108_s5  ;;  %p4104_p3 = scmp.lt.u32.totalorder %s4102_s26, %s4097_s27 }
  0x77   : > { %p4100_p7 = pnand %p4098_p10, %p5153_p13  ;;  %p4106_p1 = scmp.lt.u32.totalorder %s4097_s27, %s4493_s11 }
  0x78   : > { %p4105_p9 = por %p4104_p3, %p4103_p8 }
  0x79   : > { %p4101_p6 = pneg %p4100_p7 }
  0x7a   : > { %p4107_p2 = por %p4106_p1, %p4105_p9 }
  0x7c   : > { %p4108_p0 = pnand %p4107_p2, %p4101_p6 }
  0x7e   : > { %4111 = shalt.err (!%p4108_p0)
}
  0x7f   : > { %s4112_s15 = scalar_lea.vmem %s4495_s6, 4096  ;;  %s4256_s2 = smov [#allocation8]  }
  0x80   : > { %p4113_p12 = scmp.ne.s32.totalorder %s4495_s6, %s4112_s15  ;;  %s4117_s0 = sshll.u32 %s4256_s2, 4  ;;  %s4118_s0 = int_to_ptr.vmem [resolvable:$false] %s4117_s0 }
  0x81   : > { %s4119_s17 = scalar_lea.vmem %s4118_s0, 8192  ;;  %p4120_p11 = scmp.lt.s32.totalorder %s4495_s6, %s4118_s0 }
  0x82   : > { %p4115_p4 = pnand %p4113_p12, %p5153_p13  ;;  %p4121_p10 = scmp.lt.s32.totalorder %s4119_s17, %s4112_s15 }
  0x84   : > { %p4116_p5 = pneg %p4115_p4  ;;  %p4122_p7 = por %p4121_p10, %p4120_p11 }
  0x86   : > { %p4123_p8 = pnand %p4122_p7, %p4116_p5 }
  0x88   : > { %4126 = shalt.err (!%p4123_p8)
}
  0x89   : > { %p5154_p6 = scmp.ne.s32.totalorder %s5145_s30, 0  ;;  %s5155_s18 = smov 4  }
  0x8a   : > { %s5156_s13 = smov 64   ;;  %s4127_s27 = scalar_lea.hbm %s4425_s29, 1024 }
  0x8b   : > { %3700 = dma.hbm_to_vmem [thread:$0]  (!%p5154_p6), %s4493_s11, 4096, %s4495_s6, %s4381_s20, %s5156_s13, %s5156_s13, %s5155_s18  }
  0x8c   : > { %p4128_p3 = scmp.ne.s32.totalorder %s4425_s29, %s4127_s27  ;;  %s4132_s26 = scalar_lea.hbm %s5111_s8, 2048 }
  0x8d   : > { %p4133_p2 = scmp.lt.u32.totalorder %s4425_s29, %s5111_s8  ;;  %p4134_p0 = scmp.lt.u32.totalorder %s4132_s26, %s4127_s27 }
  0x8e   : > { %p4130_p9 = pnand %p4128_p3, %p5153_p13  ;;  %p4136_p4 = scmp.lt.u32.totalorder %s4127_s27, %s4425_s29 }
  0x8f   : > { %p4135_p12 = por %p4134_p0, %p4133_p2 }
  0x90   : > { %p4131_p1 = pneg %p4130_p9 }
  0x91   : > { %p4137_p5 = por %p4136_p4, %p4135_p12 }
  0x93   : > { %p4138_p11 = pnand %p4137_p5, %p4131_p1 }
  0x95   : > { %4141 = shalt.err (!%p4138_p11)
}
  0x96   : > { %s4142_s6 = scalar_lea.vmem %s4458_s22, 1024  ;;  %s4257_s20 = smov [#allocation11]  }
  0x97   : > { %p4143_p10 = scmp.ne.s32.totalorder %s4458_s22, %s4142_s6  ;;  %s4147_s11 = sshll.u32 %s4257_s20, 4  ;;  %s4148_s11 = int_to_ptr.vmem [resolvable:$false] %s4147_s11 }
  0x98   : > { %s4149_s15 = scalar_lea.vmem %s4148_s11, 2048  ;;  %p4150_p3 = scmp.lt.s32.totalorder %s4458_s22, %s4148_s11 }
  0x99   : > { %p4145_p7 = pnand %p4143_p10, %p5153_p13  ;;  %p4151_p9 = scmp.lt.s32.totalorder %s4149_s15, %s4142_s6 }
  0x9b   : > { %p4146_p8 = pneg %p4145_p7  ;;  %p4152_p2 = por %p4151_p9, %p4150_p3 }
  0x9d   : > { %p4153_p0 = pnand %p4152_p2, %p4146_p8 }
  0x9f   : > { %4156 = shalt.err (!%p4153_p0)
}
  0xa0   : > { %3706 = dma.hbm_to_vmem [thread:$0]  (!%p5154_p6), %s4425_s29, 1024, %s4458_s22, %s4429_s21, %s5156_s13, %s5156_s13, %s5155_s18  }
  0xa1   : > { %p5157_p13 = scmp.ne.s32.totalorder %s5151_s25, 0 }
  0xa2   : > { %p5158_p1 = scmp.eq.s32.totalorder (!%p5157_p13), %s4461_s3, 0 }
  0xa3   : > { %484 = sbr.rel (%p5157_p13) target bundleno = 3870 (0xf1e), region = 60 }
  0xaa   : > { %4208 = dma.done.wait (%p5158_p1), [#allocation4], 32   ;;  %p5159_p12 = pmov %p5158_p1 }
  0xab   : > { %s490_s30 = sand.u32 1, %s4461_s3   ;;  %s492_s24 = sand.u32 1, %s4229_s14  }
  0xac   : > { %4210 = vsyncadd (%p5159_p12), [#allocation4], 4294967264  ;;  %s3672_s2 = smul.u32 768, %s492_s24  ;;  %s491_s0 = scalar_lea.sflag [#allocation7], %s490_s30 }
  0xad   : > { %p5160_p4 = scmp.ne.s32.totalorder %s5150_s10, 0 }
  0xae   : > { %s4576_s17 = scalar_lea.vmem [#allocation6], %s3672_s2 }
  0xaf   : > { %4212 = dma.done.wait (%p5160_p4), %s491_s0, 16384  }
  0xb0   : > { %4214 = vsyncadd (%p5160_p4), %s491_s0, 4294950912  ;;  %s3273_s29 = sshll.u32 %s492_s24, 8  ;;  %s3274_s21 = sshll.u32 %s492_s24, 6 }
  0xb1   : > { %s4582_s22 = scalar_lea.vmem [#allocation8], %s3273_s29  ;;  %s509_s25 = scalar_lea.sflag [#allocation10], %s490_s30 }
  0xb2   : > { %s4584_s18 = scalar_lea.vmem [#allocation9], %s3274_s21 }
  0xb3   : > { %4216 = dma.done.wait (%p5160_p4), %s509_s25, 2048  }
  0xb4   : > { %4218 = vsyncadd (%p5160_p4), %s509_s25, 4294965248  ;;  %p602_p6 = scmp.lt.s32.totalorder %s4237_s16, 1  ;;  %s4610_s30 = scalar_lea.vmem [#allocation11], %s3274_s21 }
  0xb5   : > { %p3277_p5 = scmp.ne.s32.totalorder %s4237_s16, 0 }
  0xb6   : > { %s4592_s13 = scalar_select %p602_p6, %s4237_s16, 1 }
  0xb7   : > { %618 = sbr.rel (%p3277_p5) target bundleno = 191 (0xbf), region = 84  ;;  %s5161_s0 = sld [smem:[#allocation22_spill]] (!%p3277_p5) }
  0xb8   : > { %s3673_s27 = smul.u32 12, %s4592_s13  ;;  %s608_s26 = scalar_lea.vmem %s5110_s7, %s4592_s13 }
  0xb9   : > { %s3276_s28 = sshll.u32 %s4592_s13, 3 }
  0xba   : > { %s4603_s20 = scalar_lea.vmem %s5107_s4, %s3673_s27  ;;  %s4608_s15 = scalar_lea.vmem %s5112_s9, %s3276_s28 }
  0xbd   : > { %v619_v0 = vld [vmem:[%s5161_s0] sm:$0xff] (!%p3277_p5)  ;;  %v620_v1 = vld [vmem:[%s5161_s0 + $0x8] sm:$0xff] (!%p3277_p5) }
  0xbe   : > { %621 = vst [vmem:[#allocation12] sm:$0xff] %v619_v0  ;;  %622 = vst [vmem:[#allocation12 + $0x8] sm:$0xff] %v620_v1 }
  0xbf PF: > { %v3775_v2 = vld [vmem:[%s4576_s17 + $0x4] ss:$48 sps:$4 sm:$0xff]   ;;  %v3777_v3 = vld [vmem:[%s4576_s17] ss:$48 sps:$4 sm:$0xff]   ;;  %v4258_v4 = vmov 0   ;;  %vm4260_vm0 = vmmov 0  }
  0xc0   : > { %1303 = vmatprep.mubr.bf16.mxu0 %v4258_v4  ;;  %1346 = vmatprep.mubr.bf16.mxu1 %v4258_v4  ;;  %v3778_v5 = vld [vmem:[%s4576_s17 + $0x64] ss:$48 sps:$4 sm:$0xff]   ;;  %v3780_v6 = vld [vmem:[%s4576_s17 + $0x60] ss:$48 sps:$4 sm:$0xff]   ;;  %v3823_v17 = vld [vmem:[%s4576_s17 + $0xc] ss:$48 sps:$4 sm:$0xff]  }
  0xc1   : > { %1271 = vmatprep.subr.bf16.mxu0 %v3775_v2  ;;  %3773 = vset.pattern.permute.xlu0 %v4258_v4  ;;  %v3781_v7 = vld [vmem:[%s4576_s17 + $0xc4] ss:$48 sps:$4 sm:$0xff]   ;;  %v3783_v8 = vld [vmem:[%s4576_s17 + $0xc0] ss:$48 sps:$4 sm:$0xff]   ;;  %v3825_v18 = vld [vmem:[%s4576_s17 + $0x8] ss:$48 sps:$4 sm:$0xff]  }
  0xc2   : > { %1272 = vmatpush1.bf16.msra.mxu0 %v3777_v3  ;;  %3774 = vset.pattern.permute.xlu1 %v4258_v4  ;;  %v3784_v9 = vld [vmem:[%s4576_s17 + $0x124] ss:$48 sps:$4 sm:$0xff]   ;;  %v3786_v10 = vld [vmem:[%s4576_s17 + $0x120] ss:$48 sps:$4 sm:$0xff]   ;;  %v3826_v20 = vld [vmem:[%s4576_s17 + $0x6c] ss:$48 sps:$4 sm:$0xff]  }
  0xc3   : > { %1273 = vmatprep.subr.bf16.mxu0 %v3778_v5  ;;  %v3787_v11 = vld [vmem:[%s4576_s17 + $0x184] ss:$48 sps:$4 sm:$0xff]   ;;  %v3789_v12 = vld [vmem:[%s4576_s17 + $0x180] ss:$48 sps:$4 sm:$0xff]   ;;  %1314 = vmatprep.subr.bf16.mxu1 %v3823_v17  ;;  %v3828_v23 = vld [vmem:[%s4576_s17 + $0x68] ss:$48 sps:$4 sm:$0xff]  }
  0xc4   : > { %v3790_v13 = vld [vmem:[%s4576_s17 + $0x1e4] ss:$48 sps:$4 sm:$0xff]   ;;  %v3792_v14 = vld [vmem:[%s4576_s17 + $0x1e0] ss:$48 sps:$4 sm:$0xff]   ;;  %1315 = vmatpush1.bf16.msra.mxu1 %v3825_v18  ;;  %v3829_v24 = vld [vmem:[%s4576_s17 + $0xcc] ss:$48 sps:$4 sm:$0xff]  }
  0xc5   : > { %v3793_v15 = vld [vmem:[%s4576_s17 + $0x244] ss:$48 sps:$4 sm:$0xff]   ;;  %v3795_v16 = vld [vmem:[%s4576_s17 + $0x240] ss:$48 sps:$4 sm:$0xff]   ;;  %1316 = vmatprep.subr.bf16.mxu1 %v3826_v20  ;;  %v624_v25 = vld [vmem:[#allocation12 + $0x8] sm:$0xff]  ;;  %vm1663_vm1 = vcmask 1043456  }
  0xc6   : > { %1274 = vmatpush1.bf16.msra.mxu0 %v3780_v6  ;;  %v3796_v19 = vld [vmem:[%s4576_s17 + $0x2a4] ss:$48 sps:$4 sm:$0xff]   ;;  %v3798_v21 = vld [vmem:[%s4576_s17 + $0x2a0] ss:$48 sps:$4 sm:$0xff]   ;;  %v3831_v27 = vld [vmem:[%s4576_s17 + $0xc8] ss:$48 sps:$4 sm:$0xff]  }
  0xc7   : > { %1275 = vmatprep.subr.bf16.mxu0 %v3781_v7  ;;  %v623_v22 = vld [vmem:[#allocation12] sm:$0xff]  ;;  %v3832_v29 = vld [vmem:[%s4576_s17 + $0x12c] ss:$48 sps:$4 sm:$0xff]   ;;  %v3834_v32 = vld [vmem:[%s4576_s17 + $0x128] ss:$48 sps:$4 sm:$0xff]   ;;  %vm1635_vm2 = vcmask 64512  }
  0xc8   : > { %v3801_v26 = vld [vmem:[%s4576_s17 + $0x14] ss:$48 sps:$4 sm:$0xff]   ;;  %1317 = vmatpush1.bf16.msra.mxu1 %v3828_v23  ;;  %v4646_v28 = vpack.c.bf16 %v624_v25, %v623_v22  ;;  %v3799_v30 = vld [vmem:[%s4576_s17 + $0x10] ss:$48 sps:$4 sm:$0xff]   ;;  %v3835_v33 = vld [vmem:[%s4576_s17 + $0x18c] ss:$48 sps:$4 sm:$0xff]  }
  0xc9   : > { %1318 = vmatprep.subr.bf16.mxu1 %v3829_v24  ;;  %v3804_v31 = vld [vmem:[%s4576_s17 + $0x74] ss:$48 sps:$4 sm:$0xff]   ;;  %v3802_v34 = vld [vmem:[%s4576_s17 + $0x70] ss:$48 sps:$4 sm:$0xff]   ;;  %v3837_v36 = vld [vmem:[%s4576_s17 + $0x188] ss:$48 sps:$4 sm:$0xff]  }
  0xca   : > { %1276 = vmatpush1.bf16.msra.mxu0 %v3783_v8  ;;  %v3807_v35 = vld [vmem:[%s4576_s17 + $0xd4] ss:$48 sps:$4 sm:$0xff]   ;;  %v3838_v37 = vld [vmem:[%s4576_s17 + $0x1ec] ss:$48 sps:$4 sm:$0xff]   ;;  %v3805_v38 = vld [vmem:[%s4576_s17 + $0xd0] ss:$48 sps:$4 sm:$0xff]  }
  0xcb   : > { %1277 = vmatprep.subr.bf16.mxu0 %v3784_v9  ;;  %v3810_v39 = vld [vmem:[%s4576_s17 + $0x134] ss:$48 sps:$4 sm:$0xff]   ;;  %v3840_v40 = vld [vmem:[%s4576_s17 + $0x1e8] ss:$48 sps:$4 sm:$0xff]   ;;  %v3841_v41 = vld [vmem:[%s4576_s17 + $0x24c] ss:$48 sps:$4 sm:$0xff]  }
  0xcc   : > { %1319 = vmatpush1.bf16.msra.mxu1 %v3831_v27  ;;  %v3808_v42 = vld [vmem:[%s4576_s17 + $0x130] ss:$48 sps:$4 sm:$0xff]   ;;  %v3813_v43 = vld [vmem:[%s4576_s17 + $0x194] ss:$48 sps:$4 sm:$0xff]   ;;  %v3843_v44 = vld [vmem:[%s4576_s17 + $0x248] ss:$48 sps:$4 sm:$0xff]  }
  0xcd   : > { %1320 = vmatprep.subr.bf16.mxu1 %v3832_v29  ;;  %v3844_v45 = vld [vmem:[%s4576_s17 + $0x2ac] ss:$48 sps:$4 sm:$0xff]   ;;  %v3811_v46 = vld [vmem:[%s4576_s17 + $0x190] ss:$48 sps:$4 sm:$0xff]   ;;  %v3816_v47 = vld [vmem:[%s4576_s17 + $0x1f4] ss:$48 sps:$4 sm:$0xff]  }
  0xce   : > { %1278 = vmatpush1.bf16.msra.mxu0 %v3786_v10  ;;  %v3846_v48 = vld [vmem:[%s4576_s17 + $0x2a8] ss:$48 sps:$4 sm:$0xff]   ;;  %v3849_v49 = vld [vmem:[%s4576_s17 + $0x1c] ss:$48 sps:$4 sm:$0xff]   ;;  %v3814_v50 = vld [vmem:[%s4576_s17 + $0x1f0] ss:$48 sps:$4 sm:$0xff]  }
  0xcf   : > { %1279 = vmatprep.subr.bf16.mxu0 %v3787_v11  ;;  %v3819_v51 = vld [vmem:[%s4576_s17 + $0x254] ss:$48 sps:$4 sm:$0xff]   ;;  %v3847_v52 = vld [vmem:[%s4576_s17 + $0x18] ss:$48 sps:$4 sm:$0xff]   ;;  %v3852_v53 = vld [vmem:[%s4576_s17 + $0x7c] ss:$48 sps:$4 sm:$0xff]  }
  0xd0   : > { %1321 = vmatpush1.bf16.msra.mxu1 %v3834_v32  ;;  %v3817_v54 = vld [vmem:[%s4576_s17 + $0x250] ss:$48 sps:$4 sm:$0xff]   ;;  %v3822_v55 = vld [vmem:[%s4576_s17 + $0x2b4] ss:$48 sps:$4 sm:$0xff]   ;;  %v3850_v56 = vld [vmem:[%s4576_s17 + $0x78] ss:$48 sps:$4 sm:$0xff]  }
  0xd1   : > { %1322 = vmatprep.subr.bf16.mxu1 %v3835_v33  ;;  %v3855_v57 = vld [vmem:[%s4576_s17 + $0xdc] ss:$48 sps:$4 sm:$0xff]   ;;  %v3820_v58 = vld [vmem:[%s4576_s17 + $0x2b0] ss:$48 sps:$4 sm:$0xff]   ;;  %v3873_v59 = vld [vmem:[%s4576_s17 + $0x24] ss:$48 sps:$4 sm:$0xff]  }
  0xd2   : > { %1280 = vmatpush1.bf16.msra.mxu0 %v3789_v12  ;;  %v3853_v60 = vld [vmem:[%s4576_s17 + $0xd8] ss:$48 sps:$4 sm:$0xff]   ;;  %v3858_v61 = vld [vmem:[%s4576_s17 + $0x13c] ss:$48 sps:$4 sm:$0xff]   ;;  %v3871_v62 = vld [vmem:[%s4576_s17 + $0x20] ss:$48 sps:$4 sm:$0xff]  }
  0xd3   : > { %1281 = vmatprep.subr.bf16.mxu0 %v3790_v13  ;;  %v3856_v63 = vld [vmem:[%s4576_s17 + $0x138] ss:$48 sps:$4 sm:$0xff]   ;;  %v3861_v0 = vld [vmem:[%s4576_s17 + $0x19c] ss:$48 sps:$4 sm:$0xff]   ;;  %v3879_v11 = vld [vmem:[%s4576_s17 + $0x84] ss:$48 sps:$4 sm:$0xff]  }
  0xd4   : > { %1323 = vmatpush1.bf16.msra.mxu1 %v3837_v36  ;;  %v3859_v1 = vld [vmem:[%s4576_s17 + $0x198] ss:$48 sps:$4 sm:$0xff]   ;;  %v3864_v2 = vld [vmem:[%s4576_s17 + $0x1fc] ss:$48 sps:$4 sm:$0xff]   ;;  %v3877_v12 = vld [vmem:[%s4576_s17 + $0x80] ss:$48 sps:$4 sm:$0xff]  }
  0xd5   : > { %1324 = vmatprep.subr.bf16.mxu1 %v3838_v37  ;;  %v3862_v3 = vld [vmem:[%s4576_s17 + $0x1f8] ss:$48 sps:$4 sm:$0xff]   ;;  %v3867_v5 = vld [vmem:[%s4576_s17 + $0x25c] ss:$48 sps:$4 sm:$0xff]   ;;  %v3889_v18 = vld [vmem:[%s4576_s17 + $0x140] ss:$48 sps:$4 sm:$0xff]  }
  0xd6   : > { %1282 = vmatpush1.bf16.msra.mxu0 %v3792_v14  ;;  %v3865_v6 = vld [vmem:[%s4576_s17 + $0x258] ss:$48 sps:$4 sm:$0xff]   ;;  %v3870_v7 = vld [vmem:[%s4576_s17 + $0x2bc] ss:$48 sps:$4 sm:$0xff]   ;;  %v3897_v22 = vld [vmem:[%s4576_s17 + $0x1a4] ss:$48 sps:$4 sm:$0xff]  }
  0xd7   : > { %1283 = vmatprep.subr.bf16.mxu0 %v3793_v15  ;;  %v3868_v8 = vld [vmem:[%s4576_s17 + $0x2b8] ss:$48 sps:$4 sm:$0xff]   ;;  %v3876_v9 = vld [vmem:[%s4576_s17 + $0x2c] ss:$48 sps:$4 sm:$0xff]   ;;  %v3885_v15 = vld [vmem:[%s4576_s17 + $0xe4] ss:$48 sps:$4 sm:$0xff]  }
  0xd8   : > { %1325 = vmatpush1.bf16.msra.mxu1 %v3840_v40  ;;  %v3874_v10 = vld [vmem:[%s4576_s17 + $0x28] ss:$48 sps:$4 sm:$0xff]   ;;  %v3882_v13 = vld [vmem:[%s4576_s17 + $0x8c] ss:$48 sps:$4 sm:$0xff]   ;;  %v3895_v24 = vld [vmem:[%s4576_s17 + $0x1a0] ss:$48 sps:$4 sm:$0xff]  }
  0xd9   : > { %1326 = vmatprep.subr.bf16.mxu1 %v3841_v41  ;;  %v3880_v14 = vld [vmem:[%s4576_s17 + $0x88] ss:$48 sps:$4 sm:$0xff]   ;;  %v3894_v20 = vld [vmem:[%s4576_s17 + $0x14c] ss:$48 sps:$4 sm:$0xff]   ;;  %v3903_v25 = vld [vmem:[%s4576_s17 + $0x204] ss:$48 sps:$4 sm:$0xff]  }
  0xda   : > { %1284 = vmatpush1.bf16.msra.mxu0 %v3795_v16  ;;  %v3888_v16 = vld [vmem:[%s4576_s17 + $0xec] ss:$48 sps:$4 sm:$0xff]   ;;  %v3886_v17 = vld [vmem:[%s4576_s17 + $0xe8] ss:$48 sps:$4 sm:$0xff]   ;;  %v3901_v29 = vld [vmem:[%s4576_s17 + $0x200] ss:$48 sps:$4 sm:$0xff]  }
  0xdb   : > { %1285 = vmatprep.subr.bf16.mxu0 %v3796_v19  ;;  %v3891_v19 = vld [vmem:[%s4576_s17 + $0x144] ss:$48 sps:$4 sm:$0xff]   ;;  %v3900_v23 = vld [vmem:[%s4576_s17 + $0x1ac] ss:$48 sps:$4 sm:$0xff]   ;;  %v3907_v33 = vld [vmem:[%s4576_s17 + $0x260] ss:$48 sps:$4 sm:$0xff]  }
  0xdc   : > { %1327 = vmatpush1.bf16.msra.mxu1 %v3843_v44  ;;  %v3906_v27 = vld [vmem:[%s4576_s17 + $0x20c] ss:$48 sps:$4 sm:$0xff]   ;;  %v3913_v37 = vld [vmem:[%s4576_s17 + $0x2c0] ss:$48 sps:$4 sm:$0xff]   ;;  %s5162_s21 = sld [smem:[#allocation23_spill]]  ;;  %s4261_s13 = smov [#allocation12]  }
  0xdd   : > { %1328 = vmatprep.subr.bf16.mxu1 %v3844_v45  ;;  %v3912_v32 = vld [vmem:[%s4576_s17 + $0x26c] ss:$48 sps:$4 sm:$0xff]   ;;  %s3051_s23 = sshll.u32 %s4261_s13, 4  ;;  %p3710_p11 = scmp.eq.s32.totalorder %s4461_s3, 1  ;;  %s3052_s23 = int_to_ptr.vmem [resolvable:$true] %s3051_s23 }
  0xde   : > { %1286 = vmatpush1.bf16.msra.mxu0 %v3798_v21  ;;  %v3892_v21 = vld [vmem:[%s4576_s17 + $0x148] ss:$48 sps:$4 sm:$0xff]   ;;  %v3918_v36 = vld [vmem:[%s4576_s17 + $0x2cc] ss:$48 sps:$4 sm:$0xff]   ;;  %p4164_p3 = scmp.lt.s32.totalorder %s3052_s23, %s3052_s23 }
  0xdf   : > { %1357 = vmatprep.subr.bf16.mxu0 %v3801_v26  ;;  %v3898_v26 = vld [vmem:[%s4576_s17 + $0x1a8] ss:$48 sps:$4 sm:$0xff]  }
  0xe0   : > { %1329 = vmatpush1.bf16.msra.mxu1 %v3846_v48 }
  0xe1   : > { %1304 = vmatmul.mubr.bf16.vlgmr.msra.gmra.mrb[0].mxu0 %v4646_v28  ;;  %1400 = vmatprep.subr.bf16.mxu1 %v3849_v49 }
  0xe2   : > { %1358 = vmatpush1.bf16.msra.mxu0 %v3799_v30  ;;  %1389 = vmatprep.mubr.bf16.mxu0 %v4258_v4  ;;  %v3909_v30 = vld [vmem:[%s4576_s17 + $0x264] ss:$48 sps:$4 sm:$0xff]  }
  0xe3   : > { %1359 = vmatprep.subr.bf16.mxu0 %v3804_v31  ;;  %1347 = vmatmul.mubr.bf16.vlgmr.msra.gmra.mrb[0].mxu1 %v4646_v28  ;;  %v3904_v31 = vld [vmem:[%s4576_s17 + $0x208] ss:$48 sps:$4 sm:$0xff]  }
  0xe4   : > { %1401 = vmatpush1.bf16.msra.mxu1 %v3847_v52  ;;  %1432 = vmatprep.mubr.bf16.mxu1 %v4258_v4 }
  0xe5   : > { %1402 = vmatprep.subr.bf16.mxu1 %v3852_v53 }
  0xe6   : > { %1360 = vmatpush1.bf16.msra.mxu0 %v3802_v34  ;;  %v3915_v34 = vld [vmem:[%s4576_s17 + $0x2c4] ss:$48 sps:$4 sm:$0xff]  }
  0xe7   : > { %1361 = vmatprep.subr.bf16.mxu0 %v3807_v35  ;;  %v3910_v35 = vld [vmem:[%s4576_s17 + $0x268] ss:$48 sps:$4 sm:$0xff]  }
  0xe8   : > { %1403 = vmatpush1.bf16.msra.mxu1 %v3850_v56 }
  0xe9   : > { %1404 = vmatprep.subr.bf16.mxu1 %v3855_v57 }
  0xea   : > { %1362 = vmatpush1.bf16.msra.mxu0 %v3805_v38  ;;  %v3916_v38 = vld [vmem:[%s4576_s17 + $0x2c8] ss:$48 sps:$4 sm:$0xff]  }
  0xeb   : > { %1363 = vmatprep.subr.bf16.mxu0 %v3810_v39  ;;  %v4259_v39 = vmov 0.0  }
  0xec   : > { %1405 = vmatpush1.bf16.msra.mxu1 %v3853_v60 }
  0xed   : > { %1406 = vmatprep.subr.bf16.mxu1 %v3858_v61 }
  0xee   : > { %1364 = vmatpush1.bf16.msra.mxu0 %v3808_v42 }
  0xef   : > { %1365 = vmatprep.subr.bf16.mxu0 %v3813_v43 }
  0xf0   : > { %1407 = vmatpush1.bf16.msra.mxu1 %v3856_v63 }
  0xf1   : > { %1408 = vmatprep.subr.bf16.mxu1 %v3861_v0 }
  0xf2   : > { %1366 = vmatpush1.bf16.msra.mxu0 %v3811_v46 }
  0xf3   : > { %1367 = vmatprep.subr.bf16.mxu0 %v3816_v47 }
  0xf4   : > { %1409 = vmatpush1.bf16.msra.mxu1 %v3859_v1 }
  0xf5   : > { %1410 = vmatprep.subr.bf16.mxu1 %v3864_v2 }
  0xf6   : > { %1368 = vmatpush1.bf16.msra.mxu0 %v3814_v50 }
  0xf7   : > { %1369 = vmatprep.subr.bf16.mxu0 %v3819_v51  ;;  %v4756_v51 = vld [vmem:[%s4603_s20] sm:$0xff] }
  0xf8   : > { %1411 = vmatpush1.bf16.msra.mxu1 %v3862_v3 }
  0xf9   : > { %1412 = vmatprep.subr.bf16.mxu1 %v3867_v5 }
  0xfa   : > { %1370 = vmatpush1.bf16.msra.mxu0 %v3817_v54 }
  0xfb   : > { %1371 = vmatprep.subr.bf16.mxu0 %v3822_v55 }
  0xfc   : > { %1413 = vmatpush1.bf16.msra.mxu1 %v3865_v6 }
  0xfd   : > { %1414 = vmatprep.subr.bf16.mxu1 %v3870_v7 }
  0xfe   : > { %1372 = vmatpush1.bf16.msra.mxu0 %v3820_v58 }
  0xff   : > { %1443 = vmatprep.subr.bf16.mxu0 %v3873_v59 }
 0x100   : > { %1415 = vmatpush1.bf16.msra.mxu1 %v3868_v8 }
 0x101   : > { %1390 = vmatmul.mubr.bf16.vlgmr.msra.gmra.mrb[4].mxu0 %v4646_v28  ;;  %1486 = vmatprep.subr.bf16.mxu1 %v3876_v9  ;;  %v728_v9 = vld [vmem:[%s4603_s20 + $0x8] sm:$0xf] }
 0x102   : > { %1444 = vmatpush1.bf16.msra.mxu0 %v3871_v62  ;;  %1475 = vmatprep.mubr.bf16.mxu0 %v4258_v4 }
 0x103   : > { %1433 = vmatmul.mubr.bf16.vlgmr.msra.gmra.mrb[4].mxu1 %v4646_v28  ;;  %1445 = vmatprep.subr.bf16.mxu0 %v3879_v11 }
 0x104   : > { %1518 = vmatprep.mubr.bf16.mxu1 %v4258_v4  ;;  %1487 = vmatpush1.bf16.msra.mxu1 %v3874_v10  ;;  %v3883_v4 = vld [vmem:[%s4576_s17 + $0xe0] ss:$48 sps:$4 sm:$0xff]  }
 0x105   : > { %1488 = vmatprep.subr.bf16.mxu1 %v3882_v13 }
 0x106   : > { %1446 = vmatpush1.bf16.msra.mxu0 %v3877_v12 }
 0x107   : > { %1447 = vmatprep.subr.bf16.mxu0 %v3885_v15 }
 0x108   : > { %1489 = vmatpush1.bf16.msra.mxu1 %v3880_v14 }
 0x109   : > { %1490 = vmatprep.subr.bf16.mxu1 %v3888_v16 }
 0x10a   : > { %1448 = vmatpush1.bf16.msra.mxu0 %v3883_v4 }
 0x10b   : > { %1449 = vmatprep.subr.bf16.mxu0 %v3891_v19 }
 0x10c   : > { %1491 = vmatpush1.bf16.msra.mxu1 %v3886_v17 }
 0x10d   : > { %1492 = vmatprep.subr.bf16.mxu1 %v3894_v20 }
 0x10e   : > { %1450 = vmatpush1.bf16.msra.mxu0 %v3889_v18 }
 0x10f   : > { %1451 = vmatprep.subr.bf16.mxu0 %v3897_v22 }
 0x110   : > { %1493 = vmatpush1.bf16.msra.mxu1 %v3892_v21 }
 0x111   : > { %1494 = vmatprep.subr.bf16.mxu1 %v3900_v23 }
 0x112   : > { %1452 = vmatpush1.bf16.msra.mxu0 %v3895_v24 }
 0x113   : > { %1453 = vmatprep.subr.bf16.mxu0 %v3903_v25 }
 0x114   : > { %1495 = vmatpush1.bf16.msra.mxu1 %v3898_v26 }
 0x115   : > { %1496 = vmatprep.subr.bf16.mxu1 %v3906_v27 }
 0x116   : > { %1454 = vmatpush1.bf16.msra.mxu0 %v3901_v29 }
 0x117   : > { %1455 = vmatprep.subr.bf16.mxu0 %v3909_v30 }
 0x118   : > { %1497 = vmatpush1.bf16.msra.mxu1 %v3904_v31 }
 0x119   : > { %1498 = vmatprep.subr.bf16.mxu1 %v3912_v32 }
 0x11a   : > { %1456 = vmatpush1.bf16.msra.mxu0 %v3907_v33 }
 0x11b   : > { %1457 = vmatprep.subr.bf16.mxu0 %v3915_v34 }
 0x11c   : > { %1499 = vmatpush1.bf16.msra.mxu1 %v3910_v35 }
 0x11d   : > { %1500 = vmatprep.subr.bf16.mxu1 %v3918_v36 }
 0x11e   : > { %1458 = vmatpush1.bf16.msra.mxu0 %v3913_v37 }
 0x11f   : > { %3534 = vmatprep.subr.bf16.mxu0 %v4259_v39 }
 0x120   : > { %1501 = vmatpush1.bf16.msra.mxu1 %v3916_v38 }
 0x121   : > { %1476 = vmatmul.mubr.bf16.vlgmr.msra.gmra.mrb[8].mxu0 %v4646_v28  ;;  %3540 = vmatprep.subr.bf16.mxu1 %v4259_v39 }
 0x122   : > { %3536 = vmatprep.mubr.msk.bf16.mxu0 %vm4260_vm0, %v4259_v39 }
 0x123   : > { %1519 = vmatmul.mubr.bf16.vlgmr.msra.gmra.mrb[8].mxu1 %v4646_v28  ;;  %v731_v28 = vlaneseq }
 0x124   : > { %3542 = vmatprep.mubr.msk.bf16.mxu1 %vm4260_vm0, %v4259_v39 }
 0x125   : > { %v4741_v44 = vshrl.u32 %v731_v28, 7 }
 0x127   : > { %v749_v48 = vsub.s32 4, %v4741_v44  ;;  %v4753_v50 = vsub.s32 0, %v4741_v44  ;;  %v4783_v10 = vsub.s32 1, %v4741_v44  ;;  %v4786_v11 = vsub.s32 2, %v4741_v44 }
 0x128   : > { %v4790_v13 = vsub.s32 3, %v4741_v44 }
 0x129   : > { %v750_v52 = vrot.slane %v4756_v51, %v749_v48  ;;  %v734_v53 = vrot.slane %v4756_v51, %v4753_v50  ;;  %v766_v12 = vrot.slane %v728_v9, %v4753_v50  ;;  %v770_v14 = vrot.slane %v728_v9, %v4783_v10 }
 0x12a   : > { %v774_v15 = vrot.slane %v728_v9, %v4786_v11  ;;  %v778_v16 = vrot.slane %v728_v9, %v4790_v13 }
 0x1b4   : > { %v1305_v40 = vpop.f32.mrb[0].mxu0 }
 0x1b5   : > { %v4737_v41 = vpop.f32.mrb[1].mxu0  ;;  %v1306_v57 = vadd.f32 %v1305_v40, %v734_v53 }
 0x1b6   : > { %v1309_v42 = vpop.f32.mrb[2].mxu0  ;;  %v4743_v45 = vpop.f32.mrb[0].mxu1 }
 0x1b7   : > { %v4739_v43 = vpop.f32.mrb[3].mxu0  ;;  %v4745_v46 = vpop.f32.mrb[1].mxu1  ;;  %v1310_v62 = vadd.f32 %v1309_v42, %v734_v53  ;;  %v1529_v0 = vmul.f32 0.35355338, %v1306_v57 }
 0x1b8   : > { %v4747_v47 = vpop.f32.mrb[2].mxu1 }
 0x1b9   : > { %v4750_v49 = vpop.f32.mrb[3].mxu1  ;;  %v1533_v1 = vmul.f32 0.35355338, %v1310_v62  ;;  %v1537_v2 = vpack.c.bf16 %v1529_v0, %v1529_v0 }
 0x1bb   : > { %v1538_v3 = vpack.c.bf16 %v1533_v1, %v1533_v1 }
 0x1d4   : > { %v1391_v54 = vpop.f32.mrb[4].mxu0 }
 0x1d5   : > { %v1392_v55 = vadd.f32 %v1391_v54, %v750_v52  ;;  %v4763_v56 = vpop.f32.mrb[5].mxu0 }
 0x1d6   : > { %v1395_v58 = vpop.f32.mrb[6].mxu0  ;;  %v4773_v5 = vpop.f32.mrb[4].mxu1 }
 0x1d7   : > { %v1539_v59 = vpack.c.bf16 %v1392_v55, %v1392_v55  ;;  %v1396_v60 = vadd.f32 %v1395_v58, %v750_v52  ;;  %v4765_v61 = vpop.f32.mrb[7].mxu0  ;;  %v4775_v6 = vpop.f32.mrb[5].mxu1 }
 0x1d8   : > { %v4777_v7 = vpop.f32.mrb[6].mxu1 }
 0x1d9   : > { %v1540_v63 = vpack.c.bf16 %v1396_v60, %v1396_v60  ;;  %3535 = vmatpush3.bf16.xpose.msra.mxu0 %v1539_v59  ;;  %v4779_v8 = vpop.f32.mrb[7].mxu1  ;;  %v4817_v60 = vld [vmem:[#allocation3] ss:$0 sm:$0xff] }
 0x1da   : > { %3546 = vmatprep.subr.bf16.mxu0 %v4259_v39 }
 0x1db   : > { %3541 = vmatpush3.bf16.xpose.msra.mxu1 %v1540_v63  ;;  %v4819_v63 = vld [vmem:[#allocation3 + $0x1] ss:$0 sm:$0xff] }
 0x1dc   : > { %3552 = vmatprep.subr.bf16.mxu1 %v4259_v39 }
 0x1e0   : > { %3537 = vmatmul.mubr.bf16.vlgmr.msra.gmra.mrb[12].mxu0 %v1537_v2 }
 0x1e1   : > { %3548 = vmatprep.mubr.msk.bf16.mxu0 %vm4260_vm0, %v4259_v39 }
 0x1e2   : > { %3543 = vmatmul.mubr.bf16.vlgmr.msra.gmra.mrb[12].mxu1 %v1538_v3 }
 0x1e3   : > { %3554 = vmatprep.mubr.msk.bf16.mxu1 %vm4260_vm0, %v4259_v39 }
 0x1f4   : > { %v1477_v4 = vpop.f32.mrb[8].mxu0 }
 0x1f5   : > { %v1478_v17 = vadd.f32 %v1477_v4, %v766_v12  ;;  %v1479_v18 = vpop.f32.mrb[9].mxu0 }
 0x1f6   : > { %v1480_v19 = vadd.f32 %v1479_v18, %v770_v14  ;;  %v1481_v20 = vpop.f32.mrb[10].mxu0  ;;  %v1520_v21 = vpop.f32.mrb[8].mxu1 }
 0x1f7   : > { %v1541_v22 = vpack.c.bf16 %v1478_v17, %v1478_v17  ;;  %v1482_v23 = vadd.f32 %v1481_v20, %v766_v12  ;;  %v1483_v24 = vpop.f32.mrb[11].mxu0  ;;  %v1521_v25 = vadd.f32 %v1520_v21, %v774_v15  ;;  %v1522_v26 = vpop.f32.mrb[9].mxu1 }
 0x1f8   : > { %v1759_v27 = vpack.c.bf16 %v1480_v19, %v1480_v19  ;;  %v1484_v29 = vadd.f32 %v1483_v24, %v770_v14  ;;  %v1523_v30 = vadd.f32 %v1522_v26, %v778_v16  ;;  %v1524_v31 = vpop.f32.mrb[10].mxu1 }
 0x1f9   : > { %v1665_v32 = vsel %vm1663_vm1, %v1541_v22, 0  ;;  %v1542_v33 = vpack.c.bf16 %v1482_v23, %v1482_v23  ;;  %v1963_v34 = vpack.c.bf16 %v1521_v25, %v1521_v25  ;;  %v1525_v35 = vadd.f32 %v1524_v31, %v774_v15  ;;  %v1526_v36 = vpop.f32.mrb[11].mxu1 }
 0x1fa   : > { %v4797_v37 = vsel %vm1663_vm1, %v1759_v27, 0  ;;  %v1760_v38 = vpack.c.bf16 %v1484_v29, %v1484_v29  ;;  %v2167_v40 = vpack.c.bf16 %v1523_v30, %v1523_v30  ;;  %v1527_v42 = vadd.f32 %v1526_v36, %v778_v16  ;;  %3547 = vmatpush3.bf16.msra.mxu0 %v1665_v32 }
 0x1fb   : > { %v1711_v28 = vsel %vm1663_vm1, %v1542_v33, 0  ;;  %v4801_v52 = vsel %vm1663_vm1, %v1963_v34, 0  ;;  %v1964_v53 = vpack.c.bf16 %v1525_v35, %v1525_v35  ;;  %3558 = vmatprep.subr.bf16.mxu0 %v4259_v39  ;;  %v753_v30 = vsub.s32 5, %v4741_v44 }
 0x1fc   : > { %v4805_v54 = vsel %vm1663_vm1, %v1760_v38, 0  ;;  %v4808_v55 = vsel %vm1663_vm1, %v2167_v40, 0  ;;  %v2168_v57 = vpack.c.bf16 %v1527_v42, %v1527_v42  ;;  %3553 = vmatpush3.bf16.msra.mxu1 %v1711_v28  ;;  %v738_v33 = vrot.slane %v4756_v51, %v4783_v10 }
 0x1fd   : > { %v4811_v58 = vsel %vm1663_vm1, %v1964_v53, 0  ;;  %3564 = vmatprep.subr.bf16.mxu1 %v4259_v39  ;;  %v754_v32 = vrot.slane %v4756_v51, %v753_v30 }
 0x1fe   : > { %v4815_v59 = vsel %vm1663_vm1, %v2168_v57, 0  ;;  %v1308_v38 = vadd.f32 %v4737_v41, %v738_v33 }
 0x1ff   : > { %v1394_v35 = vadd.f32 %v4763_v56, %v754_v32  ;;  %v1398_v53 = vadd.f32 %v4765_v61, %v754_v32 }
 0x201   : > { %v1757_v28 = vpack.c.bf16 %v1394_v35, %v1394_v35  ;;  %v1758_v56 = vpack.c.bf16 %v1398_v53, %v1398_v53  ;;  %v757_v53 = vsub.s32 6, %v4741_v44 }
 0x2b3   : > { %v1589_v62 = vpop.f32.mrb[12].mxu0 }
 0x2b4   : > { %v1590_v0 = vadd.f32 %v4817_v60, %v1589_v62  ;;  %v3538_v1 = vpop.f32.mrb[13].mxu0  ;;  %v1530_v62 = vmul.f32 0.35355338, %v1308_v38 }
 0x2b5   : > { %v1592_v2 = vpop.f32.mrb[14].mxu0  ;;  %v1629_v3 = vpop.f32.mrb[12].mxu1 }
 0x2b6   : > { %v1630_v9 = vadd.f32 %v4819_v63, %v1629_v3  ;;  %v3539_v12 = vpop.f32.mrb[15].mxu0  ;;  %v3544_v14 = vpop.f32.mrb[13].mxu1  ;;  %v1636_v15 = vsel %vm1635_vm2, %v1590_v0, -inf  ;;  %v1755_v41 = vpack.c.bf16 %v1530_v62, %v1530_v62  ;;  %v758_v62 = vrot.slane %v4756_v51, %v757_v53 }
 0x2b7   : > { %v1632_v4 = vpop.f32.mrb[14].mxu1  ;;  %1637 = vmax.xlane.f32.xlu0 %v1636_v15 }
 0x2b8   : > { %v3545_v16 = vpop.f32.mrb[15].mxu1  ;;  %v1639_v17 = vsel %vm1635_vm2, %v1630_v9, -inf }
 0x2bb   : > { %1640 = vmax.xlane.f32.xlu0 %v1639_v17 }
 0x344   : > { %v1638_v18 = vpop.xlane.xlu0 %1637 }
 0x345   : > { %v1642_v19 = vsub.f32 %v1590_v0, %v1638_v18  ;;  %v1312_v0 = vadd.f32 %v4739_v43, %v738_v33 }
 0x347   : > { %v1644_v20 = vmul.f32 1.442695, %v1642_v19  ;;  %v1534_v61 = vmul.f32 0.35355338, %v1312_v0  ;;  %v742_v0 = vrot.slane %v4756_v51, %v4786_v11 }
 0x348   : > { %v1641_v21 = vpop.xlane.xlu0 %1640 }
 0x349   : > { %3967 = vpow2.f32 %v1644_v20  ;;  %v1643_v22 = vsub.f32 %v1630_v9, %v1641_v21  ;;  %v1756_v43 = vpack.c.bf16 %v1534_v61, %v1534_v61  ;;  %v1349_v61 = vadd.f32 %v4743_v45, %v742_v0 }
 0x34b   : > { %v1646_v23 = vmul.f32 1.442695, %v1643_v22 }
 0x34d   : > { %3969 = vpow2.f32 %v1646_v23 }
 0x353   : > { %v3968_v24 = vpop.eup %3967 }
 0x354   : > { %v1648_v25 = vsel %vm1635_vm2, %v3968_v24, 0.0 }
 0x355   : > { %1649 = vadd.xlane.f32.xlu1 %v1648_v25 }
 0x357   : > { %v3970_v26 = vpop.eup %3969 }
 0x358   : > { %v1651_v27 = vsel %vm1635_vm2, %v3970_v26, 0.0 }
 0x359   : > { %1652 = vadd.xlane.f32.xlu1 %v1651_v27 }
 0x3e2   : > { %v1650_v29 = vpop.xlane.xlu1 %1649 }
 0x3e3   : > { %3971 = vrcp.f32 %v1650_v29 }
 0x3e6   : > { %v1653_v31 = vpop.xlane.xlu1 %1652 }
 0x3e7   : > { %3973 = vrcp.f32 %v1653_v31 }
 0x3ed   : > { %v3972_v34 = vpop.eup %3971 }
 0x3ee   : > { %v1656_v36 = vmul.f32 %v3972_v34, %v3968_v24 }
 0x3f0   : > { %v1658_v40 = vpack.c.bf16 %v1656_v36, %v1656_v36 }
 0x3f1   : > { %v3974_v42 = vpop.eup %3973 }
 0x3f2   : > { %v1657_v57 = vmul.f32 %v3974_v42, %v3970_v26  ;;  %3549 = vmatmul.mubr.msk.bf16.vlgmr.msra.gmra.mrb[16].mxu0 %vm1635_vm2, %v1658_v40 }
 0x3f3   : > { %3559 = vmatpush3.bf16.xpose.msra.mxu0 %v1757_v28  ;;  %3560 = vmatprep.mubr.msk.bf16.mxu0 %vm4260_vm0, %v4259_v39 }
 0x3f4   : > { %v1659_v1 = vpack.c.bf16 %v1657_v57, %v1657_v57  ;;  %3570 = vmatprep.subr.bf16.mxu0 %v4259_v39 }
 0x3f6   : > { %3555 = vmatmul.mubr.msk.bf16.vlgmr.msra.gmra.mrb[16].mxu1 %vm1635_vm2, %v1659_v1 }
 0x3f7   : > { %3565 = vmatpush3.bf16.xpose.msra.mxu1 %v1758_v56  ;;  %3566 = vmatprep.mubr.msk.bf16.mxu1 %vm4260_vm0, %v4259_v39  ;;  %v1435_v56 = vadd.f32 %v4773_v5, %v758_v62 }
 0x3f8   : > { %3576 = vmatprep.subr.bf16.mxu1 %v4259_v39 }
 0x3fa   : > { %3561 = vmatmul.mubr.bf16.vlgmr.msra.gmra.mrb[20].mxu0 %v1755_v41 }
 0x3fb   : > { %3571 = vmatpush3.bf16.msra.mxu0 %v4797_v37  ;;  %3572 = vmatprep.mubr.msk.bf16.mxu0 %vm4260_vm0, %v4259_v39 }
 0x3fc   : > { %3582 = vmatprep.subr.bf16.mxu0 %v4259_v39 }
 0x3fe   : > { %3567 = vmatmul.mubr.bf16.vlgmr.msra.gmra.mrb[20].mxu1 %v1756_v43 }
 0x3ff   : > { %3577 = vmatpush3.bf16.msra.mxu1 %v4805_v54  ;;  %3578 = vmatprep.mubr.msk.bf16.mxu1 %vm4260_vm0, %v4259_v39 }
 0x400   : > { %3588 = vmatprep.subr.bf16.mxu1 %v4259_v39 }
 0x4c5   : > { %v4853_v2 = vpop.f32.mrb[16].mxu0 }
 0x4c6   : > { %v3550_v3 = vpop.f32.mrb[17].mxu0 }
 0x4c7   : > { %v1704_v9 = vpop.f32.mrb[18].mxu0 }
 0x4c8   : > { %v3551_v12 = vpop.f32.mrb[19].mxu0  ;;  %v1961_v9 = vpack.c.bf16 %v1435_v56, %v1435_v56 }
 0x4c9   : > { %v4855_v37 = vpop.f32.mrb[16].mxu1  ;;  %v1439_v12 = vadd.f32 %v4777_v7, %v758_v62 }
 0x4ca   : > { %v2375_v14 = vpack.c.bf16 %v4855_v37, %v4853_v2  ;;  %v3556_v15 = vpop.f32.mrb[17].mxu1 }
 0x4cb   : > { %v1750_v4 = vpop.f32.mrb[18].mxu1  ;;  %v1962_v5 = vpack.c.bf16 %v1439_v12, %v1439_v12  ;;  %v746_v12 = vrot.slane %v4756_v51, %v4790_v13 }
 0x4cc   : > { %v3557_v16 = vpop.f32.mrb[19].mxu1  ;;  %v1531_v4 = vmul.f32 0.35355338, %v1349_v61 }
 0x4cd   : > { %v1795_v17 = vpop.f32.mrb[20].mxu0  ;;  %v1353_v16 = vadd.f32 %v4747_v47, %v742_v0 }
 0x4ce   : > { %v1796_v54 = vadd.f32 %v4817_v60, %v1795_v17  ;;  %v3562_v18 = vpop.f32.mrb[21].mxu0  ;;  %v1959_v45 = vpack.c.bf16 %v1531_v4, %v1531_v4 }
 0x4cf   : > { %v1798_v19 = vpop.f32.mrb[22].mxu0  ;;  %v1535_v7 = vmul.f32 0.35355338, %v1353_v16 }
 0x4d0   : > { %v3563_v20 = vpop.f32.mrb[23].mxu0  ;;  %v1841_v21 = vsel %vm1635_vm2, %v1796_v54, -inf }
 0x4d1   : > { %v1835_v22 = vpop.f32.mrb[20].mxu1  ;;  %1842 = vmax.xlane.f32.xlu0 %v1841_v21  ;;  %v1960_v47 = vpack.c.bf16 %v1535_v7, %v1535_v7 }
 0x4d2   : > { %v1836_v23 = vadd.f32 %v4819_v63, %v1835_v22  ;;  %v3568_v24 = vpop.f32.mrb[21].mxu1 }
 0x4d3   : > { %v1838_v25 = vpop.f32.mrb[22].mxu1 }
 0x4d4   : > { %v3569_v26 = vpop.f32.mrb[23].mxu1  ;;  %v1844_v27 = vsel %vm1635_vm2, %v1836_v23, -inf }
 0x4d5   : > { %1845 = vmax.xlane.f32.xlu1 %v1844_v27 }
 0x55e   : > { %v1843_v29 = vpop.xlane.xlu0 %1842 }
 0x55f   : > { %v1847_v31 = vsub.f32 %v1796_v54, %v1843_v29 }
 0x561   : > { %v1849_v32 = vmul.f32 1.442695, %v1847_v31 }
 0x562   : > { %v1846_v33 = vpop.xlane.xlu1 %1845 }
 0x563   : > { %3975 = vpow2.f32 %v1849_v32  ;;  %v1848_v34 = vsub.f32 %v1836_v23, %v1846_v33 }
 0x565   : > { %v1851_v35 = vmul.f32 1.442695, %v1848_v34 }
 0x567   : > { %3977 = vpow2.f32 %v1851_v35 }
 0x56d   : > { %v3976_v36 = vpop.eup %3975 }
 0x56e   : > { %v1853_v38 = vsel %vm1635_vm2, %v3976_v36, 0.0 }
 0x56f   : > { %1854 = vadd.xlane.f32.xlu0 %v1853_v38 }
 0x571   : > { %v3978_v40 = vpop.eup %3977 }
 0x572   : > { %v1856_v42 = vsel %vm1635_vm2, %v3978_v40, 0.0 }
 0x573   : > { %1857 = vadd.xlane.f32.xlu1 %v1856_v42 }
 0x5fc   : > { %v1855_v28 = vpop.xlane.xlu0 %1854 }
 0x5fd   : > { %3979 = vrcp.f32 %v1855_v28 }
 0x600   : > { %v1858_v57 = vpop.xlane.xlu1 %1857 }
 0x601   : > { %3981 = vrcp.f32 %v1858_v57 }
 0x607   : > { %v3980_v1 = vpop.eup %3979 }
 0x608   : > { %v1861_v41 = vmul.f32 %v3980_v1, %v3976_v36 }
 0x60a   : > { %v1863_v43 = vpack.c.bf16 %v1861_v41, %v1861_v41 }
 0x60b   : > { %v3982_v3 = vpop.eup %3981 }
 0x60c   : > { %v1862_v15 = vmul.f32 %v3982_v3, %v3978_v40  ;;  %3573 = vmatmul.mubr.msk.bf16.vlgmr.msra.gmra.mrb[24].mxu0 %vm1635_vm2, %v1863_v43  ;;  %v761_v43 = vsub.s32 7, %v4741_v44 }
 0x60d   : > { %3583 = vmatpush3.bf16.xpose.msra.mxu0 %v1961_v9  ;;  %3584 = vmatprep.mubr.msk.bf16.mxu0 %vm4260_vm0, %v4259_v39 }
 0x60e   : > { %v1864_v17 = vpack.c.bf16 %v1862_v15, %v1862_v15  ;;  %3594 = vmatprep.subr.bf16.mxu0 %v4259_v39  ;;  %v762_v9 = vrot.slane %v4756_v51, %v761_v43  ;;  %v1355_v51 = vadd.f32 %v4750_v49, %v746_v12 }
 0x610   : > { %3579 = vmatmul.mubr.msk.bf16.vlgmr.msra.gmra.mrb[24].mxu1 %vm1635_vm2, %v1864_v17  ;;  %v1437_v4 = vadd.f32 %v4775_v6, %v762_v9  ;;  %v1351_v17 = vadd.f32 %v4745_v46, %v746_v12 }
 0x611   : > { %3589 = vmatpush3.bf16.xpose.msra.mxu1 %v1962_v5  ;;  %3590 = vmatprep.mubr.msk.bf16.mxu1 %vm4260_vm0, %v4259_v39 }
 0x612   : > { %3600 = vmatprep.subr.bf16.mxu1 %v4259_v39  ;;  %v2165_v7 = vpack.c.bf16 %v1437_v4, %v1437_v4 }
 0x614   : > { %3585 = vmatmul.mubr.bf16.vlgmr.msra.gmra.mrb[28].mxu0 %v1959_v45 }
 0x615   : > { %3595 = vmatpush3.bf16.msra.mxu0 %v4801_v52  ;;  %3596 = vmatprep.mubr.msk.bf16.mxu0 %vm4260_vm0, %v4259_v39 }
 0x616   : > { %3606 = vmatprep.subr.bf16.mxu0 %v4259_v39 }
 0x618   : > { %3591 = vmatmul.mubr.bf16.vlgmr.msra.gmra.mrb[28].mxu1 %v1960_v47  ;;  %v1441_v47 = vadd.f32 %v4779_v8, %v762_v9  ;;  %v1536_v8 = vmul.f32 0.35355338, %v1355_v51  ;;  %v3935_v9 = vld [vmem:[%s4582_s22 + $0xc0] sm:$0xff]  }
 0x619   : > { %3601 = vmatpush3.bf16.msra.mxu1 %v4811_v58  ;;  %3602 = vmatprep.mubr.msk.bf16.mxu1 %vm4260_vm0, %v4259_v39 }
 0x61a   : > { %3612 = vmatprep.subr.bf16.mxu1 %v4259_v39  ;;  %v2166_v6 = vpack.c.bf16 %v1441_v47, %v1441_v47  ;;  %v2164_v49 = vpack.c.bf16 %v1536_v8, %v1536_v8  ;;  %v3938_v8 = vld [vmem:[%s4582_s22 + $0x88] sm:$0xff]  }
 0x6df   : > { %v4889_v54 = vpop.f32.mrb[24].mxu0 }
 0x6e0   : > { %v3574_v18 = vpop.f32.mrb[25].mxu0 }
 0x6e1   : > { %v1908_v19 = vpop.f32.mrb[26].mxu0 }
 0x6e2   : > { %v3575_v20 = vpop.f32.mrb[27].mxu0  ;;  %v1532_v19 = vmul.f32 0.35355338, %v1351_v17  ;;  %v3920_v17 = vld [vmem:[%s4582_s22] sm:$0xff]  }
 0x6e3   : > { %v4891_v52 = vpop.f32.mrb[24].mxu1 }
 0x6e4   : > { %v2376_v21 = vpack.c.bf16 %v4891_v52, %v4889_v54  ;;  %v3580_v22 = vpop.f32.mrb[25].mxu1  ;;  %v2163_v46 = vpack.c.bf16 %v1532_v19, %v1532_v19  ;;  %v3936_v19 = vld [vmem:[%s4582_s22 + $0x80] sm:$0xff]   ;;  %v3925_v54 = vld [vmem:[%s4582_s22 + $0x58] sm:$0xff]   ;;  %v3939_v52 = vld [vmem:[%s4582_s22 + $0xd0] sm:$0xff]  }
 0x6e5   : > { %v1954_v23 = vpop.f32.mrb[26].mxu1 }
 0x6e6   : > { %v3581_v24 = vpop.f32.mrb[27].mxu1 }
 0x6e7   : > { %v1999_v25 = vpop.f32.mrb[28].mxu0 }
 0x6e8   : > { %v2000_v58 = vadd.f32 %v4817_v60, %v1999_v25  ;;  %v3586_v26 = vpop.f32.mrb[29].mxu0 }
 0x6e9   : > { %v2002_v27 = vpop.f32.mrb[30].mxu0 }
 0x6ea   : > { %v3587_v29 = vpop.f32.mrb[31].mxu0  ;;  %v2045_v31 = vsel %vm1635_vm2, %v2000_v58, -inf }
 0x6eb   : > { %v2039_v32 = vpop.f32.mrb[28].mxu1  ;;  %2046 = vmax.xlane.f32.xlu0 %v2045_v31 }
 0x6ec   : > { %v2040_v33 = vadd.f32 %v4819_v63, %v2039_v32  ;;  %v3592_v34 = vpop.f32.mrb[29].mxu1 }
 0x6ed   : > { %v2042_v35 = vpop.f32.mrb[30].mxu1 }
 0x6ee   : > { %v3593_v36 = vpop.f32.mrb[31].mxu1  ;;  %v2048_v38 = vsel %vm1635_vm2, %v2040_v33, -inf }
 0x6ef   : > { %2049 = vmax.xlane.f32.xlu1 %v2048_v38 }
 0x778   : > { %v2047_v40 = vpop.xlane.xlu0 %2046 }
 0x779   : > { %v2051_v42 = vsub.f32 %v2000_v58, %v2047_v40 }
 0x77b   : > { %v2053_v28 = vmul.f32 1.442695, %v2051_v42 }
 0x77c   : > { %v2050_v53 = vpop.xlane.xlu1 %2049 }
 0x77d   : > { %3983 = vpow2.f32 %v2053_v28  ;;  %v2052_v57 = vsub.f32 %v2040_v33, %v2050_v53 }
 0x77f   : > { %v2055_v62 = vmul.f32 1.442695, %v2052_v57 }
 0x781   : > { %3985 = vpow2.f32 %v2055_v62 }
 0x787   : > { %v3984_v0 = vpop.eup %3983 }
 0x788   : > { %v2057_v1 = vsel %vm1635_vm2, %v3984_v0, 0.0 }
 0x789   : > { %2058 = vadd.xlane.f32.xlu0 %v2057_v1 }
 0x78b   : > { %v3986_v56 = vpop.eup %3985 }
 0x78c   : > { %v2060_v41 = vsel %vm1635_vm2, %v3986_v56, 0.0 }
 0x78d   : > { %2061 = vadd.xlane.f32.xlu1 %v2060_v41 }
 0x816   : > { %v2059_v61 = vpop.xlane.xlu0 %2058 }
 0x817   : > { %3987 = vrcp.f32 %v2059_v61 }
 0x81a   : > { %v2062_v3 = vpop.xlane.xlu1 %2061 }
 0x81b   : > { %3989 = vrcp.f32 %v2062_v3  ;;  %v3919_v3 = vld [vmem:[%s4582_s22 + $0x40] sm:$0xff]  }
 0x821   : > { %v3988_v15 = vpop.eup %3987 }
 0x822   : > { %v2065_v16 = vmul.f32 %v3988_v15, %v3984_v0 }
 0x824   : > { %v2067_v5 = vpack.c.bf16 %v2065_v16, %v2065_v16 }
 0x825   : > { %v3990_v45 = vpop.eup %3989 }
 0x826   : > { %v2066_v18 = vmul.f32 %v3990_v45, %v3986_v56  ;;  %3597 = vmatmul.mubr.msk.bf16.vlgmr.msra.gmra.mrb[32].mxu0 %vm1635_vm2, %v2067_v5  ;;  %v3921_v45 = vld [vmem:[%s4582_s22 + $0x48] sm:$0xff]  }
 0x827   : > { %3607 = vmatpush3.bf16.xpose.msra.mxu0 %v2165_v7  ;;  %3608 = vmatprep.mubr.msk.bf16.mxu0 %vm4260_vm0, %v4259_v39 }
 0x828   : > { %v2068_v20 = vpack.c.bf16 %v2066_v18, %v2066_v18  ;;  %3618 = vmatprep.subr.bf16.mxu0 %v4259_v39  ;;  %v3922_v18 = vld [vmem:[%s4582_s22 + $0x8] sm:$0xff]  }
 0x82a   : > { %3603 = vmatmul.mubr.msk.bf16.vlgmr.msra.gmra.mrb[32].mxu1 %vm1635_vm2, %v2068_v20  ;;  %v3923_v20 = vld [vmem:[%s4582_s22 + $0x50] sm:$0xff]  }
 0x82b   : > { %3613 = vmatpush3.bf16.xpose.msra.mxu1 %v2166_v6  ;;  %3614 = vmatprep.mubr.msk.bf16.mxu1 %vm4260_vm0, %v4259_v39  ;;  %v3937_v6 = vld [vmem:[%s4582_s22 + $0xc8] sm:$0xff]  }
 0x82c   : > { %3624 = vmatprep.subr.bf16.mxu1 %v4259_v39 }
 0x82e   : > { %3609 = vmatmul.mubr.bf16.vlgmr.msra.gmra.mrb[36].mxu0 %v2163_v46  ;;  %v3924_v46 = vld [vmem:[%s4582_s22 + $0x10] sm:$0xff]  }
 0x82f   : > { %3619 = vmatpush3.bf16.msra.mxu0 %v4808_v55  ;;  %3620 = vmatprep.mubr.msk.bf16.mxu0 %vm4260_vm0, %v4259_v39 }
 0x830   : > { %3472 = vmatprep.subr.bf16.mxu0 %v3919_v3 }
 0x832   : > { %3615 = vmatmul.mubr.bf16.vlgmr.msra.gmra.mrb[36].mxu1 %v2164_v49  ;;  %v3940_v49 = vld [vmem:[%s4582_s22 + $0x90] sm:$0xff]  }
 0x833   : > { %3625 = vmatpush3.bf16.msra.mxu1 %v4815_v59  ;;  %3626 = vmatprep.mubr.msk.bf16.mxu1 %vm4260_vm0, %v4259_v39 }
 0x834   : > { %3494 = vmatprep.subr.bf16.mxu1 %v3935_v9 }
 0x8f9   : > { %v4923_v22 = vpop.f32.mrb[32].mxu0 }
 0x8fa   : > { %v3598_v23 = vpop.f32.mrb[33].mxu0 }
 0x8fb   : > { %v2112_v24 = vpop.f32.mrb[34].mxu0  ;;  %v3927_v23 = vld [vmem:[%s4582_s22 + $0x60] sm:$0xff]  }
 0x8fc   : > { %v3599_v25 = vpop.f32.mrb[35].mxu0  ;;  %v3941_v24 = vld [vmem:[%s4582_s22 + $0xd8] sm:$0xff]  }
 0x8fd   : > { %v4925_v58 = vpop.f32.mrb[32].mxu1  ;;  %v3928_v25 = vld [vmem:[%s4582_s22 + $0x20] sm:$0xff]  }
 0x8fe   : > { %v2377_v55 = vpack.c.bf16 %v4925_v58, %v4923_v22  ;;  %v3604_v26 = vpop.f32.mrb[33].mxu1 }
 0x8ff   : > { %v2158_v27 = vpop.f32.mrb[34].mxu1  ;;  %v3942_v26 = vld [vmem:[%s4582_s22 + $0x98] sm:$0xff]  }
 0x900   : > { %v3605_v29 = vpop.f32.mrb[35].mxu1  ;;  %v3929_v27 = vld [vmem:[%s4582_s22 + $0x68] sm:$0xff]  }
 0x901   : > { %v2203_v31 = vpop.f32.mrb[36].mxu0  ;;  %v3943_v29 = vld [vmem:[%s4582_s22 + $0xe0] sm:$0xff]  }
 0x902   : > { %v2204_v32 = vadd.f32 %v4817_v60, %v2203_v31  ;;  %v3610_v59 = vpop.f32.mrb[37].mxu0  ;;  %v3930_v31 = vld [vmem:[%s4582_s22 + $0x28] sm:$0xff]  }
 0x903   : > { %v2206_v33 = vpop.f32.mrb[38].mxu0  ;;  %v3931_v59 = vld [vmem:[%s4582_s22 + $0x70] sm:$0xff]  }
 0x904   : > { %v3611_v34 = vpop.f32.mrb[39].mxu0  ;;  %v2249_v35 = vsel %vm1635_vm2, %v2204_v32, -inf  ;;  %v3945_v33 = vld [vmem:[%s4582_s22 + $0xe8] sm:$0xff]  }
 0x905   : > { %v2243_v36 = vpop.f32.mrb[36].mxu1  ;;  %2250 = vmax.xlane.f32.xlu0 %v2249_v35  ;;  %v3932_v34 = vld [vmem:[%s4582_s22 + $0x30] sm:$0xff]   ;;  %v3946_v35 = vld [vmem:[%s4582_s22 + $0xa8] sm:$0xff]  }
 0x906   : > { %v2244_v38 = vadd.f32 %v4819_v63, %v2243_v36  ;;  %v3616_v40 = vpop.f32.mrb[37].mxu1  ;;  %v3933_v36 = vld [vmem:[%s4582_s22 + $0x78] sm:$0xff]  }
 0x907   : > { %v2246_v42 = vpop.f32.mrb[38].mxu1  ;;  %v3947_v40 = vld [vmem:[%s4582_s22 + $0xf0] sm:$0xff]  }
 0x908   : > { %v3617_v28 = vpop.f32.mrb[39].mxu1  ;;  %v2252_v53 = vsel %vm1635_vm2, %v2244_v38, -inf  ;;  %v3948_v42 = vld [vmem:[%s4582_s22 + $0xb0] sm:$0xff]  }
 0x909   : > { %2253 = vmax.xlane.f32.xlu1 %v2252_v53  ;;  %v3949_v28 = vld [vmem:[%s4582_s22 + $0xf8] sm:$0xff]  }
 0x90a   : > { %v3950_v53 = vld [vmem:[%s4582_s22 + $0xb8] sm:$0xff]  }
 0x992   : > { %v2251_v57 = vpop.xlane.xlu0 %2250 }
 0x993   : > { %v2255_v62 = vsub.f32 %v2204_v32, %v2251_v57  ;;  %v3944_v32 = vld [vmem:[%s4582_s22 + $0xa0] sm:$0xff]  }
 0x995   : > { %v2257_v60 = vmul.f32 1.442695, %v2255_v62 }
 0x996   : > { %v2254_v0 = vpop.xlane.xlu1 %2253 }
 0x997   : > { %3991 = vpow2.f32 %v2257_v60  ;;  %v2256_v1 = vsub.f32 %v2244_v38, %v2254_v0  ;;  %v3934_v38 = vld [vmem:[%s4582_s22 + $0x38] sm:$0xff]  }
 0x999   : > { %v2259_v56 = vmul.f32 1.442695, %v2256_v1 }
 0x99b   : > { %3993 = vpow2.f32 %v2259_v56 }
 0x9a1   : > { %v3992_v41 = vpop.eup %3991 }
 0x9a2   : > { %v2261_v63 = vsel %vm1635_vm2, %v3992_v41, 0.0 }
 0x9a3   : > { %2262 = vadd.xlane.f32.xlu0 %v2261_v63 }
 0x9a5   : > { %v3994_v61 = vpop.eup %3993 }
 0x9a6   : > { %v2264_v43 = vsel %vm1635_vm2, %v3994_v61, 0.0 }
 0x9a7   : > { %2265 = vadd.xlane.f32.xlu1 %v2264_v43 }
 0xa30   : > { %v2263_v12 = vpop.xlane.xlu0 %2262 }
 0xa31   : > { %3995 = vrcp.f32 %v2263_v12  ;;  %v4985_v12 = vld [vmem:[%s4608_s15] sm:$0x3f] }
 0xa34   : > { %v2266_v15 = vpop.xlane.xlu1 %2265 }
 0xa35   : > { %3997 = vrcp.f32 %v2266_v15  ;;  %v2446_v15 = vrot.slane %v4985_v12, %v4753_v50 }
 0xa3b   : > { %v3996_v4 = vpop.eup %3995 }
 0xa3c   : > { %v2269_v16 = vmul.f32 %v3996_v4, %v3992_v41 }
 0xa3e   : > { %v2271_v5 = vpack.c.bf16 %v2269_v16, %v2269_v16 }
 0xa3f   : > { %v3998_v7 = vpop.eup %3997 }
 0xa40   : > { %v2270_v47 = vmul.f32 %v3998_v7, %v3994_v61  ;;  %3621 = vmatmul.mubr.msk.bf16.vlgmr.msra.gmra.mrb[40].mxu0 %vm1635_vm2, %v2271_v5 }
 0xa41   : > { %3473 = vmatpush3.bf16.msra.mxu0 %v3920_v17  ;;  %2671 = vmatprep.mubr.bf16.mxu0 %v2376_v21  ;;  %v3926_v21 = vld [vmem:[%s4582_s22 + $0x18] sm:$0xff]  }
 0xa42   : > { %3474 = vmatprep.subr.bf16.mxu0 %v3921_v45  ;;  %v2272_v51 = vpack.c.bf16 %v2270_v47, %v2270_v47 }
 0xa44   : > { %3627 = vmatmul.mubr.msk.bf16.vlgmr.msra.gmra.mrb[40].mxu1 %vm1635_vm2, %v2272_v51  ;;  %v4008_v51 = vld [vmem:[#allocation12 + $0x8] sm:$0xff] }
 0xa45   : > { %3475 = vmatpush3.bf16.msra.mxu0 %v3922_v18  ;;  %3495 = vmatpush3.bf16.msra.mxu1 %v3936_v19  ;;  %v4007_v18 = vld [vmem:[#allocation12] sm:$0xff] }
 0xa46   : > { %3476 = vmatprep.subr.bf16.mxu0 %v3923_v20  ;;  %3496 = vmatprep.subr.bf16.mxu1 %v3937_v6 }
 0xa49   : > { %3477 = vmatpush3.bf16.msra.mxu0 %v3924_v46  ;;  %3497 = vmatpush3.bf16.msra.mxu1 %v3938_v8  ;;  %v3951_v46 = vld [vmem:[%s4584_s18] sm:$0xff]   ;;  %v3952_v8 = vld [vmem:[%s4584_s18 + $0x8] sm:$0xff]  }
 0xa4a   : > { %3478 = vmatprep.subr.bf16.mxu0 %v3925_v54  ;;  %3498 = vmatprep.subr.bf16.mxu1 %v3939_v52  ;;  %v626_v54 = vld [vmem:[%s5162_s21 + $0x8] sm:$0xff]  ;;  %v625_v52 = vld [vmem:[%s5162_s21] sm:$0xff] }
 0xa4d   : > { %3479 = vmatpush3.bf16.msra.mxu0 %v3926_v21  ;;  %3499 = vmatpush3.bf16.msra.mxu1 %v3940_v49  ;;  %v3953_v21 = vld [vmem:[%s4584_s18 + $0x10] sm:$0xff]   ;;  %v3954_v49 = vld [vmem:[%s4584_s18 + $0x18] sm:$0xff]  }
 0xa4e   : > { %3480 = vmatprep.subr.bf16.mxu0 %v3927_v23  ;;  %3500 = vmatprep.subr.bf16.mxu1 %v3941_v24  ;;  %v3955_v23 = vld [vmem:[%s4584_s18 + $0x20] sm:$0xff]   ;;  %v3956_v24 = vld [vmem:[%s4584_s18 + $0x28] sm:$0xff]  }
 0xa51   : > { %3481 = vmatpush3.bf16.msra.mxu0 %v3928_v25  ;;  %3501 = vmatpush3.bf16.msra.mxu1 %v3942_v26  ;;  %v3957_v25 = vld [vmem:[%s4584_s18 + $0x30] sm:$0xff]   ;;  %v3958_v26 = vld [vmem:[%s4584_s18 + $0x38] sm:$0xff]  }
 0xa52   : > { %3482 = vmatprep.subr.bf16.mxu0 %v3929_v27  ;;  %3502 = vmatprep.subr.bf16.mxu1 %v3943_v29  ;;  %v3959_v27 = vld [vmem:[%s4610_s30] sm:$0xff]   ;;  %v3960_v29 = vld [vmem:[%s4610_s30 + $0x8] sm:$0xff]  }
 0xa55   : > { %3483 = vmatpush3.bf16.msra.mxu0 %v3930_v31  ;;  %3503 = vmatpush3.bf16.msra.mxu1 %v3944_v32  ;;  %v3961_v31 = vld [vmem:[%s4610_s30 + $0x10] sm:$0xff]   ;;  %v3962_v32 = vld [vmem:[%s4610_s30 + $0x18] sm:$0xff]  }
 0xa56   : > { %3484 = vmatprep.subr.bf16.mxu0 %v3931_v59  ;;  %3504 = vmatprep.subr.bf16.mxu1 %v3945_v33  ;;  %v3963_v59 = vld [vmem:[%s4610_s30 + $0x20] sm:$0xff]   ;;  %v3964_v33 = vld [vmem:[%s4610_s30 + $0x28] sm:$0xff]  }
 0xa59   : > { %3485 = vmatpush3.bf16.msra.mxu0 %v3932_v34  ;;  %3505 = vmatpush3.bf16.msra.mxu1 %v3946_v35 }
 0xa5a   : > { %3486 = vmatprep.subr.bf16.mxu0 %v3933_v36  ;;  %3506 = vmatprep.subr.bf16.mxu1 %v3947_v40 }
 0xa5d   : > { %3487 = vmatpush3.bf16.msra.mxu0 %v3934_v38  ;;  %3507 = vmatpush3.bf16.msra.mxu1 %v3948_v42 }
 0xa5e   : > { %3630 = vmatprep.subr.bf16.mxu0 %v4259_v39  ;;  %3508 = vmatprep.subr.bf16.mxu1 %v3949_v28 }
 0xa60   : > { %2672 = vmatmul.mubr.bf16.vlgmr.msra.gmra.mrb[44].mxu0 %v2375_v14 }
 0xa61   : > { %3646 = vmatprep.mubr.msk.bf16.mxu0 %vm4260_vm0, %v4259_v39  ;;  %3509 = vmatpush3.bf16.msra.mxu1 %v3950_v53 }
 0xa62   : > { %3650 = vmatprep.subr.bf16.mxu1 %v4259_v39  ;;  %3631 = vmatpush3.bf16.msra.mxu0 %v3951_v46 }
 0xa63   : > { %3632 = vmatprep.subr.bf16.mxu0 %v4259_v39 }
 0xa66   : > { %3633 = vmatpush3.bf16.msra.mxu0 %v3952_v8 }
 0xa67   : > { %3634 = vmatprep.subr.bf16.mxu0 %v4259_v39 }
 0xa6a   : > { %3635 = vmatpush3.bf16.msra.mxu0 %v3953_v21 }
 0xa6b   : > { %3636 = vmatprep.subr.bf16.mxu0 %v4259_v39 }
 0xa6e   : > { %3637 = vmatpush3.bf16.msra.mxu0 %v3954_v49 }
 0xa6f   : > { %3638 = vmatprep.subr.bf16.mxu0 %v4259_v39 }
 0xa72   : > { %3639 = vmatpush3.bf16.msra.mxu0 %v3955_v23 }
 0xa73   : > { %3640 = vmatprep.subr.bf16.mxu0 %v4259_v39 }
 0xa76   : > { %3641 = vmatpush3.bf16.msra.mxu0 %v3956_v24 }
 0xa77   : > { %3642 = vmatprep.subr.bf16.mxu0 %v4259_v39 }
 0xa7a   : > { %3643 = vmatpush3.bf16.msra.mxu0 %v3957_v25 }
 0xa7b   : > { %3644 = vmatprep.subr.bf16.mxu0 %v4259_v39 }
 0xa7e   : > { %3645 = vmatpush3.bf16.msra.mxu0 %v3958_v26 }
 0xb13   : > { %v2313_v57 = vpop.f32.mrb[40].mxu0 }
 0xb14   : > { %v3622_v62 = vpop.f32.mrb[41].mxu0 }
 0xb15   : > { %v2316_v60 = vpop.f32.mrb[42].mxu0 }
 0xb16   : > { %v3623_v0 = vpop.f32.mrb[43].mxu0 }
 0xb17   : > { %v2359_v2 = vpop.f32.mrb[40].mxu1 }
 0xb18   : > { %v2378_v37 = vpack.c.bf16 %v2359_v2, %v2313_v57  ;;  %v3628_v14 = vpop.f32.mrb[41].mxu1 }
 0xb19   : > { %v2362_v1 = vpop.f32.mrb[42].mxu1 }
 0xb1a   : > { %v3629_v56 = vpop.f32.mrb[43].mxu1  ;;  %2712 = vmatprep.mubr.bf16.mxu1 %v2378_v37  ;;  %v2752_v1 = vrot.slane %v4985_v12, %v4786_v11 }
 0xb1b   : > { %2713 = vmatmul.mubr.bf16.vlgmr.msra.gmra.mrb[44].mxu1 %v2377_v55 }
 0xb1c   : > { %3666 = vmatprep.mubr.msk.bf16.mxu1 %vm4260_vm0, %v4259_v39  ;;  %3651 = vmatpush3.bf16.msra.mxu1 %v3959_v27 }
 0xb1d   : > { %3652 = vmatprep.subr.bf16.mxu1 %v4259_v39 }
 0xb20   : > { %3653 = vmatpush3.bf16.msra.mxu1 %v3960_v29 }
 0xb21   : > { %3654 = vmatprep.subr.bf16.mxu1 %v4259_v39 }
 0xb24   : > { %3655 = vmatpush3.bf16.msra.mxu1 %v3961_v31 }
 0xb25   : > { %3656 = vmatprep.subr.bf16.mxu1 %v4259_v39 }
 0xb28   : > { %3657 = vmatpush3.bf16.msra.mxu1 %v3962_v32 }
 0xb29   : > { %3658 = vmatprep.subr.bf16.mxu1 %v4259_v39 }
 0xb2c   : > { %3659 = vmatpush3.bf16.msra.mxu1 %v3963_v59 }
 0xb2d   : > { %3660 = vmatprep.subr.bf16.mxu1 %v4259_v39 }
 0xb30   : > { %3661 = vmatpush3.bf16.msra.mxu1 %v3964_v33 }
 0xb31   : > { %3662 = vmatprep.subr.bf16.mxu1 %v4259_v39 }
 0xb33   : > { %v3488_v41 = vpop.f32.mrb[44].mxu0 }
 0xb34   : > { %v3489_v63 = vpop.f32.mrb[45].mxu0 }
 0xb35   : > { %v3490_v61 = vadd.f32 %v3489_v63, %v3488_v41  ;;  %v3491_v43 = vpop.f32.mrb[46].mxu0 }
 0xb36   : > { %v3492_v3 = vpop.f32.mrb[47].mxu0 }
 0xb37   : > { %v3493_v9 = vadd.f32 %v3492_v3, %v3491_v43  ;;  %v2674_v17 = vadd.f32 %v3490_v61, %v2446_v15  ;;  %v2758_v61 = vrot.slane %v4985_v12, %v4790_v13  ;;  %v3966_v13 = vld [vmem:[%s4610_s30 + $0x38] sm:$0xff]  }
 0xb39   : > { %v2677_v55 = vadd.f32 %v3493_v9, %v2446_v15 }
 0xbee   : > { %v3510_v4 = vpop.f32.mrb[44].mxu1 }
 0xbef   : > { %v3511_v16 = vpop.f32.mrb[45].mxu1 }
 0xbf0   : > { %v3512_v5 = vadd.f32 %v3511_v16, %v3510_v4  ;;  %v3513_v22 = vpop.f32.mrb[46].mxu1 }
 0xbf1   : > { %v3514_v58 = vpop.f32.mrb[47].mxu1 }
 0xbf2   : > { %v2715_v45 = vadd.f32 %v3512_v5, %v2674_v17  ;;  %v3515_v7 = vadd.f32 %v3514_v58, %v3513_v22 }
 0xbf4   : > { %v2718_v47 = vadd.f32 %v3515_v7, %v2677_v55  ;;  %v4989_v19 = vadd.f32 %v4007_v18, %v2715_v45  ;;  %v3965_v55 = vld [vmem:[%s4610_s30 + $0x30] sm:$0xff]   ;;  %v3416_v45 = vld [vmem:[%s608_s26] ss:$0 sm:$0xff]  ;;  %s4157_s26 = scalar_lea.vmem %s3052_s23, 256 }
 0xbf5   : > { %3663 = vmatpush3.bf16.msra.mxu1 %v3965_v55  ;;  %p4158_p10 = scmp.ne.s32.totalorder %s3052_s23, %s4157_s26  ;;  %p4165_p9 = scmp.lt.s32.totalorder %s4157_s26, %s4157_s26 }
 0xbf6   : > { %2723 = vadd.xlane.f32.xlu0 %v4989_v19  ;;  %v4992_v50 = vadd.f32 %v4008_v51, %v2718_v47  ;;  %v2729_v20 = vmul.f32 %v4989_v19, %v4989_v19  ;;  %3664 = vmatprep.subr.bf16.mxu1 %v4259_v39  ;;  %v2908_v39 = vrot.slane %v4985_v12, %v4783_v10 }
 0xbf7   : > { %p4159_p7 = pnand %p4158_p10, %p3710_p11  ;;  %p4166_p2 = por %p4165_p9, %p4164_p3 }
 0xbf8   : > { %2725 = vadd.xlane.f32.xlu1 %v4992_v50  ;;  %v2730_v6 = vmul.f32 %v4992_v50, %v4992_v50 }
 0xbf9   : > { %3665 = vmatpush3.bf16.msra.mxu1 %v3966_v13  ;;  %p4160_p8 = pneg %p4159_p7 }
 0xbfa   : > { %2731 = vadd.xlane.f32.xlu0 %v2729_v20 }
 0xbfb   : > { %p4167_p0 = pnand %p4166_p2, %p4160_p8 }
 0xbfc   : > { %2733 = vadd.xlane.f32.xlu1 %v2730_v6 }
 0xc0d   : > { %2768 = vperm.xlu1 %3774, %v626_v54  }
 0xc10   : > { %2763 = vperm.xlu0 %3773, %v625_v52  }
 0xc83   : > { %v2724_v34 = vpop.xlane.xlu0 %2723 }
 0xc84   : > { %v2727_v35 = vmul.f32 0.03125, %v2724_v34 }
 0xc85   : > { %v2726_v36 = vpop.xlane.xlu1 %2725 }
 0xc86   : > { %v2728_v38 = vmul.f32 0.03125, %v2726_v36  ;;  %v2737_v42 = vmul.f32 %v2727_v35, %v2727_v35  ;;  %v2741_v14 = vsub.f32 %v4989_v19, %v2727_v35 }
 0xc87   : > { %v2732_v40 = vpop.xlane.xlu0 %2731 }
 0xc88   : > { %v2735_v28 = vmul.f32 0.03125, %v2732_v40  ;;  %v2738_v57 = vmul.f32 %v2728_v38, %v2728_v38  ;;  %v2742_v41 = vsub.f32 %v4992_v50, %v2728_v38 }
 0xc89   : > { %v2734_v53 = vpop.xlane.xlu1 %2733 }
 0xc8a   : > { %v2739_v62 = vsub.f32 %v2735_v28, %v2737_v42  ;;  %v2736_v60 = vmul.f32 0.03125, %v2734_v53 }
 0xc8c   : > { %v2743_v0 = vadd.f32 1e-05, %v2739_v62  ;;  %v2740_v2 = vsub.f32 %v2736_v60, %v2738_v57  ;;  %v3029_v57 = vrot.slane %v4985_v12, %v749_v48 }
 0xc8d   : > { %v5040_v17 = vpop.permute.xlu1 %2768 }
 0xc8e   : > { %3999 = vrsqrt.f32 %v2743_v0  ;;  %v2744_v37 = vadd.f32 1e-05, %v2740_v2  ;;  %v3035_v0 = vrot.slane %v4985_v12, %v753_v30 }
 0xc8f   : > { %v5038_v16 = vpop.permute.xlu0 %2763 }
 0xc90   : > { %4001 = vrsqrt.f32 %v2744_v37 }
 0xc98   : > { %v4000_v56 = vpop.eup %3999 }
 0xc99   : > { %v2747_v63 = vmul.f32 %v4000_v56, %v2741_v14 }
 0xc9a   : > { %v4002_v43 = vpop.eup %4001 }
 0xc9b   : > { %v2753_v3 = vmul.f32 %v2752_v1, %v2747_v63  ;;  %v2748_v9 = vmul.f32 %v4002_v43, %v2742_v41 }
 0xc9d   : > { %v2759_v15 = vadd.f32 %v2758_v61, %v2753_v3  ;;  %v2754_v4 = vmul.f32 %v2752_v1, %v2748_v9 }
 0xc9f   : > { %v2760_v11 = vadd.f32 %v2758_v61, %v2754_v4  ;;  %v2771_v5 = vmul.f32 %v5038_v16, %v2759_v15 }
 0xca1   : > { %v2772_v22 = vmul.f32 %v5040_v17, %v2760_v11 }
 0xca3   : > { %v2773_v58 = vpack.c.bf16 %v2772_v22, %v2771_v5 }
 0xca5   : > { %3647 = vmatmul.mubr.bf16.vlgmr.msra.gmra.mrb[48].mxu0 %v2773_v58 }
 0xd78   : > { %v2879_v7 = vpop.f32.mrb[48].mxu0 }
 0xd79   : > { %v2880_v47 = vadd.f32 %v3416_v45, %v2879_v7  ;;  %v3648_v18 = vpop.f32.mrb[49].mxu0 }
 0xd7a   : > { %v2882_v19 = vpop.f32.mrb[50].mxu0 }
 0xd7b   : > { %v2883_v51 = vadd.f32 %v3416_v45, %v2882_v19  ;;  %v3649_v50 = vpop.f32.mrb[51].mxu0  ;;  %v2886_v20 = vmax.f32 %v2880_v47, 0.0 }
 0xd7d   : > { %v2887_v6 = vmax.f32 %v2883_v51, 0.0 }
 0xd7f   : > { %v2888_v46 = vpack.c.bf16 %v2887_v6, %v2886_v20 }
 0xd81   : > { %3667 = vmatmul.mubr.bf16.vlgmr.msra.gmra.mrb[48].mxu1 %v2888_v46 }
 0xe54   : > { %v2991_v8 = vpop.f32.mrb[48].mxu1 }
 0xe55   : > { %v2992_v54 = vadd.f32 %v2991_v8, %v2908_v39  ;;  %v3668_v52 = vpop.f32.mrb[49].mxu1 }
 0xe56   : > { %v2994_v21 = vpop.f32.mrb[50].mxu1 }
 0xe57   : > { %v2998_v49 = vadd.f32 %v2992_v54, %v2771_v5  ;;  %v2995_v23 = vadd.f32 %v2994_v21, %v2908_v39  ;;  %v3669_v24 = vpop.f32.mrb[51].mxu1 }
 0xe59   : > { %v2999_v25 = vadd.f32 %v2995_v23, %v2772_v22  ;;  %3000 = vadd.xlane.f32.xlu1 %v2998_v49  ;;  %v3006_v26 = vmul.f32 %v2998_v49, %v2998_v49 }
 0xe5b   : > { %3002 = vadd.xlane.f32.xlu0 %v2999_v25  ;;  %v3007_v27 = vmul.f32 %v2999_v25, %v2999_v25 }
 0xe5d   : > { %3008 = vadd.xlane.f32.xlu1 %v3006_v26 }
 0xe61   : > { %3010 = vadd.xlane.f32.xlu1 %v3007_v27 }
 0xee6   : > { %v3001_v29 = vpop.xlane.xlu1 %3000 }
 0xee7   : > { %v3004_v31 = vmul.f32 0.03125, %v3001_v29 }
 0xee8   : > { %v3003_v32 = vpop.xlane.xlu0 %3002 }
 0xee9   : > { %v3014_v33 = vmul.f32 %v3004_v31, %v3004_v31  ;;  %v3005_v10 = vmul.f32 0.03125, %v3003_v32  ;;  %v3018_v62 = vsub.f32 %v2998_v49, %v3004_v31 }
 0xeea   : > { %v3009_v59 = vpop.xlane.xlu1 %3008 }
 0xeeb   : > { %v3012_v34 = vmul.f32 0.03125, %v3009_v59  ;;  %v3015_v38 = vmul.f32 %v3005_v10, %v3005_v10  ;;  %v3019_v37 = vsub.f32 %v2999_v25, %v3005_v10 }
 0xeed   : > { %v3016_v35 = vsub.f32 %v3012_v34, %v3014_v33 }
 0xeee   : > { %v3011_v36 = vpop.xlane.xlu1 %3010 }
 0xeef   : > { %v3020_v40 = vadd.f32 1e-05, %v3016_v35  ;;  %v3013_v42 = vmul.f32 0.03125, %v3011_v36 }
 0xef1   : > { %4003 = vrsqrt.f32 %v3020_v40  ;;  %v3017_v28 = vsub.f32 %v3013_v42, %v3015_v38 }
 0xef3   : > { %v3021_v53 = vadd.f32 1e-05, %v3017_v28 }
 0xef5   : > { %4005 = vrsqrt.f32 %v3021_v53 }
 0xefb   : > { %v4004_v60 = vpop.eup %4003 }
 0xefc   : > { %v3024_v2 = vmul.f32 %v4004_v60, %v3018_v62 }
 0xefe   : > { %v3030_v14 = vmul.f32 %v3029_v57, %v3024_v2 }
 0xeff   : > { %v4006_v1 = vpop.eup %4005 }
 0xf00   : > { %v3025_v56 = vmul.f32 %v4006_v1, %v3019_v37  ;;  %v3036_v41 = vadd.f32 %v3035_v0, %v3030_v14 }
 0xf02   : > { %v3031_v63 = vmul.f32 %v3029_v57, %v3025_v56  ;;  %v3038_v61 = vmul.f32 %v3036_v41, %v5038_v16 }
 0xf04   : > { %v3037_v48 = vadd.f32 %v3035_v0, %v3031_v63  ;;  %3040 = vst [vmem:[#allocation12] sm:$0xff] %v3038_v61 }
 0xf06   : > { %v3039_v44 = vmul.f32 %v3037_v48, %v5040_v17 }
 0xf08   : > { %3041 = vst [vmem:[#allocation12 + $0x8] sm:$0xff] %v3039_v44 }
 0xf09   : > { %4170 = shalt.err (!%p4167_p0)
}
 0xf0a   : > { %s5163_s6 = sld [smem:[#allocation26_spill]] }
 0xf10   : > { %s4171_s20 = scalar_lea.hbm %s5163_s6, 256 }
 0xf11   : > { %p4172_p13 = scmp.ne.s32.totalorder %s5163_s6, %s4171_s20  ;;  %p4177_p4 = scmp.lt.u32.totalorder %s4171_s20, %s5163_s6 }
 0xf13   : > { %p4173_p1 = pnand %p4172_p13, %p3710_p11 }
 0xf15   : > { %p4174_p12 = pneg %p4173_p1 }
 0xf17   : > { %p4179_p6 = pnand %p4177_p4, %p4174_p12 }
 0xf19   : > { %4182 = shalt.err (!%p4179_p6)
}
 0xf1a   : > { %s4262_s24 = smov 128   ;;  %s4263_s2 = smov 8  }
 0xf1b   : > { %3687 = dma.vmem_to_hbm [thread:$0]  (%p3710_p11), %s3052_s23, 256, %s5163_s6, [#allocation5], %s4262_s24, %s4262_s24, %s4263_s2  }
 0xf1c   : > { %4220 = dma.done.wait (%p3710_p11), [#allocation5], 256  }
 0xf1d   : > { %4222 = vsyncadd (%p3710_p11), [#allocation5], 4294967040 }
 0xf1e PF: > { %s5164_s16 = sld [smem:[#allocation19_spill]]  ;;  %s5165_s17 = sld [smem:[#allocation17_spill]] }
 0xf1f   : > { %s5166_s15 = sld [smem:[#allocation21_spill]]  ;;  %s5168_s22 = sld [smem:[#allocation20_spill]] }
 0xf20   : > { %s5169_s13 = smov %s4229_s14 }
 0xf24   : > { %s28_s18 = sadd.s32 1, %s5164_s16   ;;  %s5167_s16 = sld [smem:[#allocation18_spill]] }
 0xf25   : > { %p25_p5 = scmp.ge.s32.totalorder %s28_s18, 4   ;;  %s5170_s14 = smov %s5165_s17 }
 0xf26   : > { %s5171_s17 = smov %s5168_s22 }
 0xf27   :  { %27 = sbr.rel (!%p25_p5) target bundleno = 14 (0xe), region = 158 }
 0xf2e   :  { %3067 = vsyncpa [#allocation4], 1 }
 0xf2f   :  { %3069 = vsyncpa [#allocation4 + $0x1], 1 }
 0xf30   :  { %3070 = vsyncpa [#allocation7], 1 }
 0xf31   :  { %3072 = vsyncpa [#allocation7 + $0x1], 1 }
 0xf32   :  { %3073 = vsyncpa [#allocation10], 1 }
 0xf33   :  { %3075 = vsyncpa [#allocation10 + $0x1], 1 }
 0xf34   :  { %3076 = vsyncpa [#allocation5], 1 }
 0xf35   :  { %3078 = vsyncpa [#allocation5 + $0x1], 1 }

</bundles_post_ra>
